<compile_context>
chip_gen: v7x
topology: tpu7x:2x2x1
jax: 0.10.0
libtpu: 0.0.40
codegen_flags: <defaults>
</compile_context>

<pallas_src>
import jax
import jax.numpy as jnp
from jax.experimental import pallas as pl
from jax.experimental.pallas import tpu as pltpu

LEAKY_SLOPE = 0.01      # F.leaky_relu default negative_slope
LANE = 128              # TPU lane width
TILE_N_MAX = 1024       # rows per grid step (multiple of 128)


def _round_up(x, m):
    return ((x + m - 1) // m) * m


def _elementwise_dtype():
    """bf16 elementwise math on v6e/v7x (bf16 VPU); f32 on v5e and older."""
    try:
        kind = jax.devices()[0].device_kind.lower()
    except Exception:
        return jnp.float32
    if any(tag in kind for tag in ("v2", "v3", "v4", "v5")):
        return jnp.float32
    return jnp.bfloat16


def _choose_tile_n(n):
    """Large tiles to amortize per-step overhead, but >=2 steps once n>=16."""
    n = max(int(n), 1)
    if n < 16:
        return _round_up(n, 8)
    half = -(-n // 2)                       # cdiv(n, 2) -> at least 2 grid steps
    align = 128 if half >= 128 else 16      # 16 keeps bf16 blocks sublane-aligned
    return int(min(TILE_N_MAX, _round_up(half, align)))


# ----------------------------------------------------------------------------
# Kernel: entire 8-layer MLP fused; one (tile_n, d_in) row tile per grid step.
#   layers 0..6 : Linear + leaky_relu   (input_layer + 6 hidden_layers)
#   layer  7    : Linear + relu         (output_layer)
# Weights are bf16; MXU accumulates in f32; bias-add/activation run in the
# bias dtype (bf16 on v6e/v7x, f32 on v5e).
# ----------------------------------------------------------------------------
def ddqn_mlp_kernel(x_ref, *refs):
    o_ref = refs[-1]
    param_refs = refs[:-1]                    # w0, b0, w1, b1, ..., w7, b7
    n_layers = len(param_refs) // 2

    h = x_ref[...]
    for li in range(n_layers):
        w = param_refs[2 * li][...]           # bf16 (in_pad, out_pad)
        b = param_refs[2 * li + 1][...]       # act-dtype (1, out_pad)
        acc = jnp.dot(h.astype(w.dtype), w,
                      preferred_element_type=jnp.float32)
        h = acc.astype(b.dtype) + b
        if li < n_layers - 1:
            h = jnp.maximum(h, LEAKY_SLOPE * h)      # leaky_relu
        else:
            h = jnp.maximum(h, 0.0)                  # relu on output layer
    o_ref[...] = h.astype(o_ref.dtype)


# ----------------------------------------------------------------------------
# Parameter construction (deterministic, PyTorch-default-style uniform init).
# Weight layout is (in_features, out_features): y = x @ W + b.
# ----------------------------------------------------------------------------
def make_params(input_dim, output_dim, key):
    dims = [input_dim, 60 * input_dim]                 # input_layer
    for i in range(2, 8):                              # hidden_layers
        dims.append(int(60 * input_dim / i))
    dims.append(output_dim)                            # output_layer
    # e.g. input_dim=8 -> [8, 480, 240, 160, 120, 96, 80, 68, 4]

    params = []
    for fan_in, fan_out in zip(dims[:-1], dims[1:]):
        key, kw, kb = jax.random.split(key, 3)
        bound = 1.0 / jnp.sqrt(jnp.float32(fan_in))
        w = jax.random.uniform(kw, (fan_in, fan_out), jnp.float32, -bound, bound)
        b = jax.random.uniform(kb, (fan_out,), jnp.float32, -bound, bound)
        params.append((w, b))
    return params


# ----------------------------------------------------------------------------
# Padding: layer-0 fan_in -> multiple of 16 (bf16 sublanes); every output
# width -> multiple of 128 (lane-dense activations / unmasked vst); each
# layer's fan_in matches the previous layer's padded output.  Weights bf16,
# biases in the elementwise dtype.  Pad entries are exactly zero.
# ----------------------------------------------------------------------------
def pad_params(params, act_dtype):
    padded = []
    prev_out_pad = _round_up(params[0][0].shape[0], 16)
    for w, b in params:
        fi, fo = w.shape
        fi_p, fo_p = prev_out_pad, _round_up(fo, LANE)
        w_p = jnp.zeros((fi_p, fo_p), jnp.float32).at[:fi, :fo].set(w)
        b_p = jnp.zeros((1, fo_p), jnp.float32).at[0, :fo].set(b)
        padded.append((w_p.astype(jnp.bfloat16), b_p.astype(act_dtype)))
        prev_out_pad = fo_p
    return padded


# ----------------------------------------------------------------------------
# Wrapper: forward_item (the hot path) through the Pallas kernel.
# ----------------------------------------------------------------------------
def forward_item(x, padded_params, out_dim):
    n, d = x.shape
    d_in = padded_params[0][0].shape[0]        # padded first-layer fan_in (16)
    out_pad = padded_params[-1][0].shape[1]

    tile_n = _choose_tile_n(n)
    n_pad = _round_up(n, tile_n)
    x_p = jnp.zeros((n_pad, d_in), jnp.float32).at[:n, :d].set(x)

    flat = []
    in_specs = [pl.BlockSpec((tile_n, d_in), lambda i: (i, 0))]
    for w, b in padded_params:
        flat.append(w)
        flat.append(b)
        # Full blocks, constant index -> DMA'd once, VMEM-resident thereafter.
        in_specs.append(pl.BlockSpec(w.shape, lambda i: (0, 0)))
        in_specs.append(pl.BlockSpec(b.shape, lambda i: (0, 0)))

    flops = 2 * n_pad * sum(int(w.shape[0]) * int(w.shape[1])
                            for w, _ in padded_params)
    bytes_accessed = (x_p.size * 4 + n_pad * out_pad * 2 +
                      sum(w.size * 2 + b.size * b.dtype.itemsize
                          for w, b in padded_params))

    y = pl.pallas_call(
        ddqn_mlp_kernel,
        out_shape=jax.ShapeDtypeStruct((n_pad, out_pad), jnp.bfloat16),
        grid=(n_pad // tile_n,),
        in_specs=in_specs,
        out_specs=pl.BlockSpec((tile_n, out_pad), lambda i: (i, 0)),
        compiler_params=pltpu.CompilerParams(
            dimension_semantics=("parallel",)),
        cost_estimate=pl.CostEstimate(
            flops=int(flops), transcendentals=0,
            bytes_accessed=int(bytes_accessed)),
    )(x_p, *flat)

    return y[:n, :out_dim].astype(jnp.float32)


# ----------------------------------------------------------------------------
# Pure-JAX reference mirroring the kernel math (bf16 MXU operands, f32
# accumulation, bias/activation in the same elementwise dtype, bf16 store).
# ----------------------------------------------------------------------------
def forward_item_ref(x, padded_params, out_dim):
    n, d = x.shape
    d_in = padded_params[0][0].shape[0]
    h = jnp.zeros((n, d_in), jnp.float32).at[:, :d].set(x)
    n_layers = len(padded_params)
    for li, (w, b) in enumerate(padded_params):
        acc = jnp.dot(h.astype(jnp.bfloat16).astype(jnp.float32),
                      w.astype(jnp.float32))
        h = acc.astype(b.dtype) + b
        if li < n_layers - 1:
            h = jnp.maximum(h, LEAKY_SLOPE * h)
        else:
            h = jnp.maximum(h, 0.0)
    return h.astype(jnp.bfloat16).astype(jnp.float32)[:, :out_dim]


# ----------------------------------------------------------------------------
# Full DDQNOne.forward semantics: flatten a list-of-lists of state vectors,
# run the MLP once on the batched rows, then split back per-group and flatten
# each group's Q-values.
# ----------------------------------------------------------------------------
def ddqn_forward(X, padded_params, out_dim):
    lengths = [len(xi) for xi in X]
    x = jnp.concatenate(
        [jnp.asarray(xi, dtype=jnp.float32).reshape(len(xi), -1) for xi in X],
        axis=0)
    y = forward_item(x, padded_params, out_dim)
    out_y = []
    c = 0
    for l in lengths:                       # static offsets, split outside kernel
        out_y.append(y[c:c + l].reshape(-1))
        c += l
    return out_y


if __name__ == "__main__":
    input_dim = 8
    output_dim = 4

    key = jax.random.PRNGKey(0)
    k_param, k_data, k_big = jax.random.split(key, 3)

    act_dtype = _elementwise_dtype()
    params = make_params(input_dim, output_dim, k_param)
    padded_params = pad_params(params, act_dtype)

    # X: list of "machine groups" of variable length, each entry a state vec.
    data = jax.random.normal(k_data, (8, input_dim), jnp.float32)
    X = [list(data[:3]), list(data[3:])]          # lengths = [3, 5]

    outs = ddqn_forward(X, padded_params, output_dim)
    for o in outs:
        jax.block_until_ready(o)

    # Shape / semantics checks (final ReLU -> non-negative Q-values).
    assert outs[0].shape == (3 * output_dim,)
    assert outs[1].shape == (5 * output_dim,)
    assert all(bool(jnp.all(o >= 0.0)) for o in outs)

    # Numerical check against a pure-JAX reference of the same dtype path.
    y_kernel = forward_item(data, padded_params, output_dim)
    y_ref = forward_item_ref(data, padded_params, output_dim)
    assert bool(jnp.allclose(y_kernel, y_ref, atol=3e-2, rtol=3e-2))

    # Larger batch exercises a multi-step grid (>=2 steps -> v7x megacore path)
    # plus row padding.
    big = jax.random.normal(k_big, (40, input_dim), jnp.float32)
    y_big = forward_item(big, padded_params, output_dim)
    jax.block_until_ready(y_big)
    y_big_ref = forward_item_ref(big, padded_params, output_dim)
    assert y_big.shape == (40, output_dim)
    assert bool(jnp.all(y_big >= 0.0))
    assert bool(jnp.allclose(y_big, y_big_ref, atol=3e-2, rtol=3e-2))

    print("KERNEL_OK")
</pallas_src>

<mosaic_0001>
module attributes {stable_mosaic.version = 11 : i64} {
  func.func @ddqn_mlp_kernel(%arg0: i32, %arg1: memref<8x16xf32, #tpu.memory_space<vmem>>, %arg2: memref<16x512xbf16, #tpu.memory_space<vmem>>, %arg3: memref<1x512xbf16, #tpu.memory_space<vmem>>, %arg4: memref<512x256xbf16, #tpu.memory_space<vmem>>, %arg5: memref<1x256xbf16, #tpu.memory_space<vmem>>, %arg6: memref<256x256xbf16, #tpu.memory_space<vmem>>, %arg7: memref<1x256xbf16, #tpu.memory_space<vmem>>, %arg8: memref<256x128xbf16, #tpu.memory_space<vmem>>, %arg9: memref<1x128xbf16, #tpu.memory_space<vmem>>, %arg10: memref<128x128xbf16, #tpu.memory_space<vmem>>, %arg11: memref<1x128xbf16, #tpu.memory_space<vmem>>, %arg12: memref<128x128xbf16, #tpu.memory_space<vmem>>, %arg13: memref<1x128xbf16, #tpu.memory_space<vmem>>, %arg14: memref<128x128xbf16, #tpu.memory_space<vmem>>, %arg15: memref<1x128xbf16, #tpu.memory_space<vmem>>, %arg16: memref<128x128xbf16, #tpu.memory_space<vmem>>, %arg17: memref<1x128xbf16, #tpu.memory_space<vmem>>, %arg18: memref<8x128xbf16, #tpu.memory_space<vmem>>) attributes {dimension_semantics = [#tpu.dimension_semantics<parallel>], iteration_bounds = array<i64: 1>, scalar_prefetch = 0 : i64, scratch_operands = 0 : i64, tpu.core_type = #tpu.core_type<tc>, window_params = [{transform_indices = @transform_0, window_bounds = array<i64: 8, 16>}, {pipeline_mode = #tpu.pipeline_mode<synchronous>, transform_indices = @transform_1, window_bounds = array<i64: 16, 512>}, {pipeline_mode = #tpu.pipeline_mode<synchronous>, transform_indices = @transform_2, window_bounds = array<i64: 1, 512>}, {pipeline_mode = #tpu.pipeline_mode<synchronous>, transform_indices = @transform_3, window_bounds = array<i64: 512, 256>}, {pipeline_mode = #tpu.pipeline_mode<synchronous>, transform_indices = @transform_4, window_bounds = array<i64: 1, 256>}, {pipeline_mode = #tpu.pipeline_mode<synchronous>, transform_indices = @transform_5, window_bounds = array<i64: 256, 256>}, {pipeline_mode = #tpu.pipeline_mode<synchronous>, transform_indices = @transform_6, window_bounds = array<i64: 1, 256>}, {pipeline_mode = #tpu.pipeline_mode<synchronous>, transform_indices = @transform_7, window_bounds = array<i64: 256, 128>}, {pipeline_mode = #tpu.pipeline_mode<synchronous>, transform_indices = @transform_8, window_bounds = array<i64: 1, 128>}, {pipeline_mode = #tpu.pipeline_mode<synchronous>, transform_indices = @transform_9, window_bounds = array<i64: 128, 128>}, {pipeline_mode = #tpu.pipeline_mode<synchronous>, transform_indices = @transform_10, window_bounds = array<i64: 1, 128>}, {pipeline_mode = #tpu.pipeline_mode<synchronous>, transform_indices = @transform_11, window_bounds = array<i64: 128, 128>}, {pipeline_mode = #tpu.pipeline_mode<synchronous>, transform_indices = @transform_12, window_bounds = array<i64: 1, 128>}, {pipeline_mode = #tpu.pipeline_mode<synchronous>, transform_indices = @transform_13, window_bounds = array<i64: 128, 128>}, {pipeline_mode = #tpu.pipeline_mode<synchronous>, transform_indices = @transform_14, window_bounds = array<i64: 1, 128>}, {pipeline_mode = #tpu.pipeline_mode<synchronous>, transform_indices = @transform_15, window_bounds = array<i64: 128, 128>}, {pipeline_mode = #tpu.pipeline_mode<synchronous>, transform_indices = @transform_16, window_bounds = array<i64: 1, 128>}, {transform_indices = @transform_17, window_bounds = array<i64: 8, 128>}]} {
    %c0 = arith.constant 0 : index
    %c0_0 = arith.constant 0 : index
    %0 = vector.load %arg1[%c0, %c0_0] : memref<8x16xf32, #tpu.memory_space<vmem>>, vector<8x16xf32>
    %c0_1 = arith.constant 0 : index
    %c0_2 = arith.constant 0 : index
    %1 = vector.load %arg2[%c0_1, %c0_2] : memref<16x512xbf16, #tpu.memory_space<vmem>>, vector<16x512xbf16>
    %c0_3 = arith.constant 0 : index
    %c0_4 = arith.constant 0 : index
    %2 = vector.load %arg3[%c0_3, %c0_4] : memref<1x512xbf16, #tpu.memory_space<vmem>>, vector<1x512xbf16>
    %3 = arith.truncf %0 : vector<8x16xf32> to vector<8x16xbf16>
    %cst = arith.constant dense<0.000000e+00> : vector<8x512xf32>
    %4 = tpu.matmul %3, %1, %cst {dimension_numbers = #tpu.dot_dimension_numbers<[1], [0], [0], [1], [0, 0, 1, 1], [], []>} : vector<8x16xbf16>, vector<16x512xbf16>, vector<8x512xf32> -> vector<8x512xf32>
    %5 = arith.truncf %4 : vector<8x512xf32> to vector<8x512xbf16>
    %6 = vector.broadcast %2 : vector<1x512xbf16> to vector<8x512xbf16>
    %7 = arith.addf %5, %6 : vector<8x512xbf16>
    %cst_5 = arith.constant 1.000980e-02 : bf16
    %8 = vector.broadcast %cst_5 : bf16 to vector<8x512xbf16>
    %9 = arith.mulf %8, %7 : vector<8x512xbf16>
    %10 = arith.maximumf %7, %9 : vector<8x512xbf16>
    %c0_6 = arith.constant 0 : index
    %c0_7 = arith.constant 0 : index
    %11 = vector.load %arg4[%c0_6, %c0_7] : memref<512x256xbf16, #tpu.memory_space<vmem>>, vector<512x256xbf16>
    %c0_8 = arith.constant 0 : index
    %c0_9 = arith.constant 0 : index
    %12 = vector.load %arg5[%c0_8, %c0_9] : memref<1x256xbf16, #tpu.memory_space<vmem>>, vector<1x256xbf16>
    %cst_10 = arith.constant dense<0.000000e+00> : vector<8x256xf32>
    %13 = tpu.matmul %10, %11, %cst_10 {dimension_numbers = #tpu.dot_dimension_numbers<[1], [0], [0], [1], [0, 0, 1, 1], [], []>} : vector<8x512xbf16>, vector<512x256xbf16>, vector<8x256xf32> -> vector<8x256xf32>
    %14 = arith.truncf %13 : vector<8x256xf32> to vector<8x256xbf16>
    %15 = vector.broadcast %12 : vector<1x256xbf16> to vector<8x256xbf16>
    %16 = arith.addf %14, %15 : vector<8x256xbf16>
    %cst_11 = arith.constant 1.000980e-02 : bf16
    %17 = vector.broadcast %cst_11 : bf16 to vector<8x256xbf16>
    %18 = arith.mulf %17, %16 : vector<8x256xbf16>
    %19 = arith.maximumf %16, %18 : vector<8x256xbf16>
    %c0_12 = arith.constant 0 : index
    %c0_13 = arith.constant 0 : index
    %20 = vector.load %arg6[%c0_12, %c0_13] : memref<256x256xbf16, #tpu.memory_space<vmem>>, vector<256x256xbf16>
    %c0_14 = arith.constant 0 : index
    %c0_15 = arith.constant 0 : index
    %21 = vector.load %arg7[%c0_14, %c0_15] : memref<1x256xbf16, #tpu.memory_space<vmem>>, vector<1x256xbf16>
    %cst_16 = arith.constant dense<0.000000e+00> : vector<8x256xf32>
    %22 = tpu.matmul %19, %20, %cst_16 {dimension_numbers = #tpu.dot_dimension_numbers<[1], [0], [0], [1], [0, 0, 1, 1], [], []>} : vector<8x256xbf16>, vector<256x256xbf16>, vector<8x256xf32> -> vector<8x256xf32>
    %23 = arith.truncf %22 : vector<8x256xf32> to vector<8x256xbf16>
    %24 = vector.broadcast %21 : vector<1x256xbf16> to vector<8x256xbf16>
    %25 = arith.addf %23, %24 : vector<8x256xbf16>
    %cst_17 = arith.constant 1.000980e-02 : bf16
    %26 = vector.broadcast %cst_17 : bf16 to vector<8x256xbf16>
    %27 = arith.mulf %26, %25 : vector<8x256xbf16>
    %28 = arith.maximumf %25, %27 : vector<8x256xbf16>
    %c0_18 = arith.constant 0 : index
    %c0_19 = arith.constant 0 : index
    %29 = vector.load %arg8[%c0_18, %c0_19] : memref<256x128xbf16, #tpu.memory_space<vmem>>, vector<256x128xbf16>
    %c0_20 = arith.constant 0 : index
    %c0_21 = arith.constant 0 : index
    %30 = vector.load %arg9[%c0_20, %c0_21] : memref<1x128xbf16, #tpu.memory_space<vmem>>, vector<1x128xbf16>
    %cst_22 = arith.constant dense<0.000000e+00> : vector<8x128xf32>
    %31 = tpu.matmul %28, %29, %cst_22 {dimension_numbers = #tpu.dot_dimension_numbers<[1], [0], [0], [1], [0, 0, 1, 1], [], []>} : vector<8x256xbf16>, vector<256x128xbf16>, vector<8x128xf32> -> vector<8x128xf32>
    %32 = arith.truncf %31 : vector<8x128xf32> to vector<8x128xbf16>
    %33 = vector.broadcast %30 : vector<1x128xbf16> to vector<8x128xbf16>
    %34 = arith.addf %32, %33 : vector<8x128xbf16>
    %cst_23 = arith.constant 1.000980e-02 : bf16
    %35 = vector.broadcast %cst_23 : bf16 to vector<8x128xbf16>
    %36 = arith.mulf %35, %34 : vector<8x128xbf16>
    %37 = arith.maximumf %34, %36 : vector<8x128xbf16>
    %c0_24 = arith.constant 0 : index
    %c0_25 = arith.constant 0 : index
    %38 = vector.load %arg10[%c0_24, %c0_25] : memref<128x128xbf16, #tpu.memory_space<vmem>>, vector<128x128xbf16>
    %c0_26 = arith.constant 0 : index
    %c0_27 = arith.constant 0 : index
    %39 = vector.load %arg11[%c0_26, %c0_27] : memref<1x128xbf16, #tpu.memory_space<vmem>>, vector<1x128xbf16>
    %cst_28 = arith.constant dense<0.000000e+00> : vector<8x128xf32>
    %40 = tpu.matmul %37, %38, %cst_28 {dimension_numbers = #tpu.dot_dimension_numbers<[1], [0], [0], [1], [0, 0, 1, 1], [], []>} : vector<8x128xbf16>, vector<128x128xbf16>, vector<8x128xf32> -> vector<8x128xf32>
    %41 = arith.truncf %40 : vector<8x128xf32> to vector<8x128xbf16>
    %42 = vector.broadcast %39 : vector<1x128xbf16> to vector<8x128xbf16>
    %43 = arith.addf %41, %42 : vector<8x128xbf16>
    %cst_29 = arith.constant 1.000980e-02 : bf16
    %44 = vector.broadcast %cst_29 : bf16 to vector<8x128xbf16>
    %45 = arith.mulf %44, %43 : vector<8x128xbf16>
    %46 = arith.maximumf %43, %45 : vector<8x128xbf16>
    %c0_30 = arith.constant 0 : index
    %c0_31 = arith.constant 0 : index
    %47 = vector.load %arg12[%c0_30, %c0_31] : memref<128x128xbf16, #tpu.memory_space<vmem>>, vector<128x128xbf16>
    %c0_32 = arith.constant 0 : index
    %c0_33 = arith.constant 0 : index
    %48 = vector.load %arg13[%c0_32, %c0_33] : memref<1x128xbf16, #tpu.memory_space<vmem>>, vector<1x128xbf16>
    %cst_34 = arith.constant dense<0.000000e+00> : vector<8x128xf32>
    %49 = tpu.matmul %46, %47, %cst_34 {dimension_numbers = #tpu.dot_dimension_numbers<[1], [0], [0], [1], [0, 0, 1, 1], [], []>} : vector<8x128xbf16>, vector<128x128xbf16>, vector<8x128xf32> -> vector<8x128xf32>
    %50 = arith.truncf %49 : vector<8x128xf32> to vector<8x128xbf16>
    %51 = vector.broadcast %48 : vector<1x128xbf16> to vector<8x128xbf16>
    %52 = arith.addf %50, %51 : vector<8x128xbf16>
    %cst_35 = arith.constant 1.000980e-02 : bf16
    %53 = vector.broadcast %cst_35 : bf16 to vector<8x128xbf16>
    %54 = arith.mulf %53, %52 : vector<8x128xbf16>
    %55 = arith.maximumf %52, %54 : vector<8x128xbf16>
    %c0_36 = arith.constant 0 : index
    %c0_37 = arith.constant 0 : index
    %56 = vector.load %arg14[%c0_36, %c0_37] : memref<128x128xbf16, #tpu.memory_space<vmem>>, vector<128x128xbf16>
    %c0_38 = arith.constant 0 : index
    %c0_39 = arith.constant 0 : index
    %57 = vector.load %arg15[%c0_38, %c0_39] : memref<1x128xbf16, #tpu.memory_space<vmem>>, vector<1x128xbf16>
    %cst_40 = arith.constant dense<0.000000e+00> : vector<8x128xf32>
    %58 = tpu.matmul %55, %56, %cst_40 {dimension_numbers = #tpu.dot_dimension_numbers<[1], [0], [0], [1], [0, 0, 1, 1], [], []>} : vector<8x128xbf16>, vector<128x128xbf16>, vector<8x128xf32> -> vector<8x128xf32>
    %59 = arith.truncf %58 : vector<8x128xf32> to vector<8x128xbf16>
    %60 = vector.broadcast %57 : vector<1x128xbf16> to vector<8x128xbf16>
    %61 = arith.addf %59, %60 : vector<8x128xbf16>
    %cst_41 = arith.constant 1.000980e-02 : bf16
    %62 = vector.broadcast %cst_41 : bf16 to vector<8x128xbf16>
    %63 = arith.mulf %62, %61 : vector<8x128xbf16>
    %64 = arith.maximumf %61, %63 : vector<8x128xbf16>
    %c0_42 = arith.constant 0 : index
    %c0_43 = arith.constant 0 : index
    %65 = vector.load %arg16[%c0_42, %c0_43] : memref<128x128xbf16, #tpu.memory_space<vmem>>, vector<128x128xbf16>
    %c0_44 = arith.constant 0 : index
    %c0_45 = arith.constant 0 : index
    %66 = vector.load %arg17[%c0_44, %c0_45] : memref<1x128xbf16, #tpu.memory_space<vmem>>, vector<1x128xbf16>
    %cst_46 = arith.constant dense<0.000000e+00> : vector<8x128xf32>
    %67 = tpu.matmul %64, %65, %cst_46 {dimension_numbers = #tpu.dot_dimension_numbers<[1], [0], [0], [1], [0, 0, 1, 1], [], []>} : vector<8x128xbf16>, vector<128x128xbf16>, vector<8x128xf32> -> vector<8x128xf32>
    %68 = arith.truncf %67 : vector<8x128xf32> to vector<8x128xbf16>
    %69 = vector.broadcast %66 : vector<1x128xbf16> to vector<8x128xbf16>
    %70 = arith.addf %68, %69 : vector<8x128xbf16>
    %cst_47 = arith.constant 0.000000e+00 : bf16
    %71 = vector.broadcast %cst_47 : bf16 to vector<8x128xbf16>
    %72 = arith.maximumf %70, %71 : vector<8x128xbf16>
    %c0_48 = arith.constant 0 : index
    %c0_49 = arith.constant 0 : index
    %73 = vector.load %arg18[%c0_48, %c0_49] : memref<8x128xbf16, #tpu.memory_space<vmem>>, vector<8x128xbf16>
    tpu.vector_store %arg18[%c0_48, %c0_49], %72 {strides = array<i32>} : memref<8x128xbf16, #tpu.memory_space<vmem>>, vector<8x128xbf16>,
    return
  }
  func.func @transform_0(%arg0: i32) -> (i32, i32) {
    %c0_i32 = arith.constant 0 : i32
    %c0_i32_0 = arith.constant 0 : i32
    return %arg0, %c0_i32 : i32, i32
  }
  func.func @transform_1(%arg0: i32) -> (i32, i32) {
    %c0_i32 = arith.constant 0 : i32
    %c0_i32_0 = arith.constant 0 : i32
    %c0_i32_1 = arith.constant 0 : i32
    return %c0_i32, %c0_i32_0 : i32, i32
  }
  func.func @transform_2(%arg0: i32) -> (i32, i32) {
    %c0_i32 = arith.constant 0 : i32
    %c0_i32_0 = arith.constant 0 : i32
    %c0_i32_1 = arith.constant 0 : i32
    return %c0_i32, %c0_i32_0 : i32, i32
  }
  func.func @transform_3(%arg0: i32) -> (i32, i32) {
    %c0_i32 = arith.constant 0 : i32
    %c0_i32_0 = arith.constant 0 : i32
    %c0_i32_1 = arith.constant 0 : i32
    return %c0_i32, %c0_i32_0 : i32, i32
  }
  func.func @transform_4(%arg0: i32) -> (i32, i32) {
    %c0_i32 = arith.constant 0 : i32
    %c0_i32_0 = arith.constant 0 : i32
    %c0_i32_1 = arith.constant 0 : i32
    return %c0_i32, %c0_i32_0 : i32, i32
  }
  func.func @transform_5(%arg0: i32) -> (i32, i32) {
    %c0_i32 = arith.constant 0 : i32
    %c0_i32_0 = arith.constant 0 : i32
    %c0_i32_1 = arith.constant 0 : i32
    return %c0_i32, %c0_i32_0 : i32, i32
  }
  func.func @transform_6(%arg0: i32) -> (i32, i32) {
    %c0_i32 = arith.constant 0 : i32
    %c0_i32_0 = arith.constant 0 : i32
    %c0_i32_1 = arith.constant 0 : i32
    return %c0_i32, %c0_i32_0 : i32, i32
  }
  func.func @transform_7(%arg0: i32) -> (i32, i32) {
    %c0_i32 = arith.constant 0 : i32
    %c0_i32_0 = arith.constant 0 : i32
    %c0_i32_1 = arith.constant 0 : i32
    return %c0_i32, %c0_i32_0 : i32, i32
  }
  func.func @transform_8(%arg0: i32) -> (i32, i32) {
    %c0_i32 = arith.constant 0 : i32
    %c0_i32_0 = arith.constant 0 : i32
    %c0_i32_1 = arith.constant 0 : i32
    return %c0_i32, %c0_i32_0 : i32, i32
  }
  func.func @transform_9(%arg0: i32) -> (i32, i32) {
    %c0_i32 = arith.constant 0 : i32
    %c0_i32_0 = arith.constant 0 : i32
    %c0_i32_1 = arith.constant 0 : i32
    return %c0_i32, %c0_i32_0 : i32, i32
  }
  func.func @transform_10(%arg0: i32) -> (i32, i32) {
    %c0_i32 = arith.constant 0 : i32
    %c0_i32_0 = arith.constant 0 : i32
    %c0_i32_1 = arith.constant 0 : i32
    return %c0_i32, %c0_i32_0 : i32, i32
  }
  func.func @transform_11(%arg0: i32) -> (i32, i32) {
    %c0_i32 = arith.constant 0 : i32
    %c0_i32_0 = arith.constant 0 : i32
    %c0_i32_1 = arith.constant 0 : i32
    return %c0_i32, %c0_i32_0 : i32, i32
  }
  func.func @transform_12(%arg0: i32) -> (i32, i32) {
    %c0_i32 = arith.constant 0 : i32
    %c0_i32_0 = arith.constant 0 : i32
    %c0_i32_1 = arith.constant 0 : i32
    return %c0_i32, %c0_i32_0 : i32, i32
  }
  func.func @transform_13(%arg0: i32) -> (i32, i32) {
    %c0_i32 = arith.constant 0 : i32
    %c0_i32_0 = arith.constant 0 : i32
    %c0_i32_1 = arith.constant 0 : i32
    return %c0_i32, %c0_i32_0 : i32, i32
  }
  func.func @transform_14(%arg0: i32) -> (i32, i32) {
    %c0_i32 = arith.constant 0 : i32
    %c0_i32_0 = arith.constant 0 : i32
    %c0_i32_1 = arith.constant 0 : i32
    return %c0_i32, %c0_i32_0 : i32, i32
  }
  func.func @transform_15(%arg0: i32) -> (i32, i32) {
    %c0_i32 = arith.constant 0 : i32
    %c0_i32_0 = arith.constant 0 : i32
    %c0_i32_1 = arith.constant 0 : i32
    return %c0_i32, %c0_i32_0 : i32, i32
  }
  func.func @transform_16(%arg0: i32) -> (i32, i32) {
    %c0_i32 = arith.constant 0 : i32
    %c0_i32_0 = arith.constant 0 : i32
    %c0_i32_1 = arith.constant 0 : i32
    return %c0_i32, %c0_i32_0 : i32, i32
  }
  func.func @transform_17(%arg0: i32) -> (i32, i32) {
    %c0_i32 = arith.constant 0 : i32
    %c0_i32_0 = arith.constant 0 : i32
    return %arg0, %c0_i32 : i32, i32
  }
}

</mosaic_0001>

<bundles_post_ra>
// kernel: tpu_custom_call.1
= control target key start
LH: loop header
LB: loop body
LE: loop exit
PB: predicated region body
PF: predicated region fallthrough
CT: control target
= control target key end

     0   :  { %s2934_s0 = inlined_call_operand.hbm [shape: f32[8,16], index: 0, kind: input, shape index: {}]   ;;  %s2935_s1 = inlined_call_operand.hbm [shape: bf16[16,512], index: 1, kind: input, shape index: {}]   ;;  %s2936_s2 = inlined_call_operand.vmem [shape: bf16[1,512], index: 2, kind: input, shape index: {}]   ;;  %s2937_s3 = inlined_call_operand.hbm [shape: bf16[512,256], index: 3, kind: input, shape index: {}]   ;;  %s2938_s4 = inlined_call_operand.vmem [shape: bf16[1,256], index: 4, kind: input, shape index: {}]   ;;  %s2939_s5 = inlined_call_operand.hbm [shape: bf16[256,256], index: 5, kind: input, shape index: {}]   ;;  %s2940_s6 = inlined_call_operand.vmem [shape: bf16[1,256], index: 6, kind: input, shape index: {}]   ;;  %s2941_s7 = inlined_call_operand.hbm [shape: bf16[256,128], index: 7, kind: input, shape index: {}]   ;;  %s2942_s8 = inlined_call_operand.vmem [shape: bf16[1,128], index: 8, kind: input, shape index: {}]   ;;  %s2943_s9 = inlined_call_operand.hbm [shape: bf16[128,128], index: 9, kind: input, shape index: {}]   ;;  %s2944_s10 = inlined_call_operand.vmem [shape: bf16[1,128], index: 10, kind: input, shape index: {}]   ;;  %s2945_s11 = inlined_call_operand.hbm [shape: bf16[128,128], index: 11, kind: input, shape index: {}]   ;;  %s2946_s12 = inlined_call_operand.vmem [shape: bf16[1,128], index: 12, kind: input, shape index: {}]   ;;  %s2947_s13 = inlined_call_operand.hbm [shape: bf16[128,128], index: 13, kind: input, shape index: {}]   ;;  %s2948_s14 = inlined_call_operand.vmem [shape: bf16[1,128], index: 14, kind: input, shape index: {}]   ;;  %s2949_s15 = inlined_call_operand.hbm [shape: bf16[128,128], index: 15, kind: input, shape index: {}]   ;;  %s2950_s16 = inlined_call_operand.vmem [shape: bf16[1,128], index: 16, kind: input, shape index: {}]   ;;  %s2951_s17 = inlined_call_operand.hbm [shape: bf16[8,128], index: 17, kind: output, shape index: {}]  }
   0x1   :  { %2956 = sst [smem:[#allocation24_spill]] %s2934_s0 }
   0x2   :  { %2957 = sst [smem:[#allocation25_spill]] %s2935_s1 }
   0x3   :  { %2958 = sst [smem:[#allocation26_spill]] %s2951_s17 }
   0x4   :  { %22 = vsyncpa [#allocation3], 0 }
   0x5   :  { %23 = vsyncpa [#allocation6], 0 }
   0x6   :  { %24 = vsyncpa [#allocation9], 0 }
   0x7   :  { %25 = vsyncpa [#allocation12], 0 }
   0x8   :  { %26 = vsyncpa [#allocation15], 0 }
   0x9   :  { %27 = vsyncpa [#allocation4], 0  ;;  %s2560_s24 = smov [#allocation5]   ;;  %s2959_s28 = sld [smem:[#allocation25_spill]] }
   0xa   :  { %s43_s25 = sshll.u32 %s2560_s24, 4  ;;  %s44_s25 = int_to_ptr.vmem [resolvable:$true] %s43_s25 }
   0xf   :  { %s2328_s29 = scalar_lea.hbm %s2959_s28, 512 }
  0x10   :  { %p2329_p0 = scmp.ne.s32.totalorder %s2959_s28, %s2328_s29  ;;  %p2332_p1 = scmp.lt.u32.totalorder %s2328_s29, %s2959_s28 }
  0x12   :  { %p2334_p2 = pnand %p2332_p1, %p2329_p0 }
  0x14   :  { %2337 = shalt.err (!%p2334_p2)
}
  0x15   :  { %s2338_s1 = scalar_lea.vmem %s44_s25, 512  ;;  %p2343_p4 = scmp.lt.s32.totalorder %s44_s25, %s44_s25 }
  0x16   :  { %p2339_p3 = scmp.ne.s32.totalorder %s44_s25, %s2338_s1  ;;  %p2344_p5 = scmp.lt.s32.totalorder %s2338_s1, %s2338_s1 }
  0x18   :  { %p2345_p6 = por %p2344_p5, %p2343_p4 }
  0x1a   :  { %p2346_p7 = pnand %p2345_p6, %p2339_p3 }
  0x1c   :  { %2349 = shalt.err (!%p2346_p7)
}
  0x1d   :  { %s2561_s20 = smov 256   ;;  %s2562_s21 = smov 16  }
  0x1e   :  { %49 = dma.hbm_to_vmem [thread:$0]  %s2959_s28, 512, %s44_s25, [#allocation6], %s2561_s20, %s2561_s20, %s2562_s21  }
  0x1f   :  { %s2563_s24 = smov [#allocation8]   ;;  %s2350_s0 = scalar_lea.hbm %s2939_s5, 4096 }
  0x20   :  { %s71_s26 = sshll.u32 %s2563_s24, 4  ;;  %p2351_p8 = scmp.ne.s32.totalorder %s2939_s5, %s2350_s0  ;;  %s72_s26 = int_to_ptr.vmem [resolvable:$true] %s71_s26 }
  0x21   :  { %p2354_p9 = scmp.lt.u32.totalorder %s2350_s0, %s2939_s5 }
  0x23   :  { %p2356_p10 = pnand %p2354_p9, %p2351_p8 }
  0x25   :  { %2359 = shalt.err (!%p2356_p10)
}
  0x26   :  { %s2360_s17 = scalar_lea.vmem %s72_s26, 4096  ;;  %p2365_p12 = scmp.lt.s32.totalorder %s72_s26, %s72_s26 }
  0x27   :  { %p2361_p11 = scmp.ne.s32.totalorder %s72_s26, %s2360_s17  ;;  %p2366_p13 = scmp.lt.s32.totalorder %s2360_s17, %s2360_s17 }
  0x29   :  { %p2367_p0 = por %p2366_p13, %p2365_p12 }
  0x2b   :  { %p2368_p1 = pnand %p2367_p0, %p2361_p11 }
  0x2d   :  { %2371 = shalt.err (!%p2368_p1)
}
  0x2e   :  { %s2955_s25 = smov 128   ;;  %s2565_s28 = smov 8  }
  0x2f   :  { %77 = dma.hbm_to_vmem [thread:$0]  %s2939_s5, 4096, %s72_s26, [#allocation9], %s2955_s25, %s2955_s25, %s2565_s28  }
  0x30   :  { %s2566_s22 = smov [#allocation11]   ;;  %s2567_s24 = smov [#allocation14]  }
  0x31   :  { %s99_s23 = sshll.u32 %s2566_s22, 4  ;;  %s127_s27 = sshll.u32 %s2567_s24, 4  ;;  %s100_s23 = int_to_ptr.vmem [resolvable:$true] %s99_s23  ;;  %s2697_s27 = int_to_ptr.vmem [resolvable:$true] %s127_s27 }
  0x32   :  { %s2372_s0 = scalar_lea.hbm %s2943_s9, 1024 }
  0x33   :  { %p2373_p2 = scmp.ne.s32.totalorder %s2943_s9, %s2372_s0  ;;  %p2376_p3 = scmp.lt.u32.totalorder %s2372_s0, %s2943_s9 }
  0x35   :  { %p2378_p4 = pnand %p2376_p3, %p2373_p2 }
  0x37   :  { %2381 = shalt.err (!%p2378_p4)
}
  0x38   :  { %s2382_s5 = scalar_lea.vmem %s100_s23, 1024  ;;  %p2387_p6 = scmp.lt.s32.totalorder %s100_s23, %s100_s23 }
  0x39   :  { %p2383_p5 = scmp.ne.s32.totalorder %s100_s23, %s2382_s5  ;;  %p2388_p7 = scmp.lt.s32.totalorder %s2382_s5, %s2382_s5 }
  0x3b   :  { %p2389_p8 = por %p2388_p7, %p2387_p6 }
  0x3d   :  { %p2390_p9 = pnand %p2389_p8, %p2383_p5 }
  0x3f   :  { %2393 = shalt.err (!%p2390_p9)
}
  0x40   :  { %s2568_s26 = smov 64   ;;  %s2569_s20 = smov 4  }
  0x41   :  { %105 = dma.hbm_to_vmem [thread:$0]  %s2943_s9, 1024, %s100_s23, [#allocation12], %s2568_s26, %s2568_s26, %s2569_s20  }
  0x42   :  { %s2394_s29 = scalar_lea.hbm %s2947_s13, 1024 }
  0x43   :  { %p2395_p10 = scmp.ne.s32.totalorder %s2947_s13, %s2394_s29  ;;  %p2398_p11 = scmp.lt.u32.totalorder %s2394_s29, %s2947_s13 }
  0x45   :  { %p2400_p12 = pnand %p2398_p11, %p2395_p10 }
  0x47   :  { %2403 = shalt.err (!%p2400_p12)
}
  0x48   :  { %s2404_s1 = scalar_lea.vmem %s2697_s27, 1024  ;;  %p2409_p0 = scmp.lt.s32.totalorder %s2697_s27, %s2697_s27 }
  0x49   :  { %p2405_p13 = scmp.ne.s32.totalorder %s2697_s27, %s2404_s1  ;;  %p2410_p1 = scmp.lt.s32.totalorder %s2404_s1, %s2404_s1 }
  0x4b   :  { %p2411_p2 = por %p2410_p1, %p2409_p0 }
  0x4d   :  { %p2412_p3 = pnand %p2411_p2, %p2405_p13 }
  0x4f   :  { %2415 = shalt.err (!%p2412_p3)
}
  0x50   :  { %133 = dma.hbm_to_vmem [thread:$0]  %s2947_s13, 1024, %s2697_s27, [#allocation15], %s2568_s26, %s2568_s26, %s2569_s20  }
  0x51   :  { %s2570_s5 = smov [#allocation2]   ;;  %s2571_s22 = smov [#allocation7]  }
  0x52   :  { %s34_s21 = sshll.u32 %s2570_s5, 4  ;;  %s57_s24 = sshll.u32 %s2571_s22, 4  ;;  %s35_s21 = int_to_ptr.vmem [resolvable:$true] %s34_s21  ;;  %s2734_s24 = int_to_ptr.vmem [resolvable:$true] %s57_s24 }
  0x53   :  { %s2960_s0 = sld [smem:[#allocation24_spill]] }
  0x59   :  { %s2416_s30 = scalar_lea.hbm %s2960_s0, 128 }
  0x5a   :  { %p2417_p4 = scmp.ne.s32.totalorder %s2960_s0, %s2416_s30  ;;  %p2420_p5 = scmp.lt.u32.totalorder %s2416_s30, %s2960_s0 }
  0x5c   :  { %p2422_p6 = pnand %p2420_p5, %p2417_p4 }
  0x5e   :  { %2425 = shalt.err (!%p2422_p6)
}
  0x5f   :  { %s2426_s13 = scalar_lea.vmem %s35_s21, 128  ;;  %p2431_p8 = scmp.lt.s32.totalorder %s35_s21, %s35_s21 }
  0x60   :  { %p2427_p7 = scmp.ne.s32.totalorder %s35_s21, %s2426_s13  ;;  %p2432_p9 = scmp.lt.s32.totalorder %s2426_s13, %s2426_s13 }
  0x62   :  { %p2433_p10 = por %p2432_p9, %p2431_p8 }
  0x64   :  { %p2434_p11 = pnand %p2433_p10, %p2427_p7 }
  0x66   :  { %2437 = shalt.err (!%p2434_p11)
}
  0x67   :  { %37 = dma.hbm_to_vmem [thread:$0]  %s2960_s0, 128, %s35_s21, [#allocation3]  }
  0x68   :  { %s2438_s22 = scalar_lea.hbm %s2937_s3, 8192 }
  0x69   :  { %p2439_p12 = scmp.ne.s32.totalorder %s2937_s3, %s2438_s22  ;;  %p2442_p13 = scmp.lt.u32.totalorder %s2438_s22, %s2937_s3 }
  0x6b   :  { %p2444_p0 = pnand %p2442_p13, %p2439_p12 }
  0x6d   :  { %2447 = shalt.err (!%p2444_p0)
}
  0x6e   :  { %s2448_s18 = scalar_lea.vmem %s2734_s24, 8192  ;;  %p2453_p2 = scmp.lt.s32.totalorder %s2734_s24, %s2734_s24 }
  0x6f   :  { %p2449_p1 = scmp.ne.s32.totalorder %s2734_s24, %s2448_s18  ;;  %p2454_p3 = scmp.lt.s32.totalorder %s2448_s18, %s2448_s18 }
  0x71   :  { %p2455_p4 = por %p2454_p3, %p2453_p2 }
  0x73   :  { %p2456_p5 = pnand %p2455_p4, %p2449_p1 }
  0x75   :  { %2459 = shalt.err (!%p2456_p5)
}
  0x76   :  { %s2961_s21 = smov 128   ;;  %s2572_s1 = smov [#allocation10]  }
  0x77   :  { %63 = dma.hbm_to_vmem [thread:$0]  %s2937_s3, 8192, %s2734_s24, [#allocation6], %s2961_s21, %s2961_s21, %s2565_s28  }
  0x78   :  { %s85_s13 = sshll.u32 %s2572_s1, 4  ;;  %s2573_s27 = smov [#allocation13]   ;;  %s86_s13 = int_to_ptr.vmem [resolvable:$true] %s85_s13 }
  0x79   :  { %s113_s9 = sshll.u32 %s2573_s27, 4  ;;  %s2460_s22 = scalar_lea.hbm %s2941_s7, 2048  ;;  %s2768_s9 = int_to_ptr.vmem [resolvable:$true] %s113_s9 }
  0x7a   :  { %p2461_p6 = scmp.ne.s32.totalorder %s2941_s7, %s2460_s22  ;;  %p2464_p7 = scmp.lt.u32.totalorder %s2460_s22, %s2941_s7 }
  0x7c   :  { %p2466_p8 = pnand %p2464_p7, %p2461_p6 }
  0x7e   :  { %2469 = shalt.err (!%p2466_p8)
}
  0x7f   :  { %s2470_s3 = scalar_lea.vmem %s86_s13, 2048  ;;  %p2475_p10 = scmp.lt.s32.totalorder %s86_s13, %s86_s13 }
  0x80   :  { %p2471_p9 = scmp.ne.s32.totalorder %s86_s13, %s2470_s3  ;;  %p2476_p11 = scmp.lt.s32.totalorder %s2470_s3, %s2470_s3 }
  0x82   :  { %p2477_p12 = por %p2476_p11, %p2475_p10 }
  0x84   :  { %p2478_p13 = pnand %p2477_p12, %p2471_p9 }
  0x86   :  { %2481 = shalt.err (!%p2478_p13)
}
  0x87   :  { %91 = dma.hbm_to_vmem [thread:$0]  %s2941_s7, 2048, %s86_s13, [#allocation9], %s2568_s26, %s2568_s26, %s2569_s20  }
  0x88   :  { %s2482_s0 = scalar_lea.hbm %s2945_s11, 1024 }
  0x89   :  { %p2483_p0 = scmp.ne.s32.totalorder %s2945_s11, %s2482_s0  ;;  %p2486_p1 = scmp.lt.u32.totalorder %s2482_s0, %s2945_s11 }
  0x8b   :  { %p2488_p2 = pnand %p2486_p1, %p2483_p0 }
  0x8d   :  { %2491 = shalt.err (!%p2488_p2)
}
  0x8e   :  { %s2492_s5 = scalar_lea.vmem %s2768_s9, 1024  ;;  %p2497_p4 = scmp.lt.s32.totalorder %s2768_s9, %s2768_s9 }
  0x8f   :  { %p2493_p3 = scmp.ne.s32.totalorder %s2768_s9, %s2492_s5  ;;  %p2498_p5 = scmp.lt.s32.totalorder %s2492_s5, %s2492_s5 }
  0x91   :  { %p2499_p6 = por %p2498_p5, %p2497_p4 }
  0x93   :  { %p2500_p7 = pnand %p2499_p6, %p2493_p3 }
  0x95   :  { %2503 = shalt.err (!%p2500_p7)
}
  0x96   :  { %119 = dma.hbm_to_vmem [thread:$0]  %s2945_s11, 1024, %s2768_s9, [#allocation12], %s2568_s26, %s2568_s26, %s2569_s20  }
  0x97   :  { %s2574_s22 = smov [#allocation16]   ;;  %s2504_s30 = scalar_lea.hbm %s2949_s15, 1024 }
  0x98   :  { %s141_s17 = sshll.u32 %s2574_s22, 4  ;;  %p2505_p8 = scmp.ne.s32.totalorder %s2949_s15, %s2504_s30  ;;  %s142_s17 = int_to_ptr.vmem [resolvable:$true] %s141_s17 }
  0x99   :  { %p2508_p9 = scmp.lt.u32.totalorder %s2504_s30, %s2949_s15 }
  0x9b   :  { %p2510_p10 = pnand %p2508_p9, %p2505_p8 }
  0x9d   :  { %2513 = shalt.err (!%p2510_p10)
}
  0x9e   :  { %s2514_s21 = scalar_lea.vmem %s142_s17, 1024  ;;  %p2519_p12 = scmp.lt.s32.totalorder %s142_s17, %s142_s17 }
  0x9f   :  { %p2515_p11 = scmp.ne.s32.totalorder %s142_s17, %s2514_s21  ;;  %p2520_p13 = scmp.lt.s32.totalorder %s2514_s21, %s2514_s21 }
  0xa1   :  { %p2521_p0 = por %p2520_p13, %p2519_p12 }
  0xa3   :  { %p2522_p1 = pnand %p2521_p0, %p2515_p11 }
  0xa5   :  { %2525 = shalt.err (!%p2522_p1)
}
  0xa6   :  { %147 = dma.hbm_to_vmem [thread:$0]  %s2949_s15, 1024, %s142_s17, [#allocation15], %s2568_s26, %s2568_s26, %s2569_s20  }
  0xa7   :  { %2548 = dma.done.wait [#allocation3], 128  }
  0xa8   :  { %2549 = vsyncadd [#allocation3], 4294967168 }
  0xa9   :  { %2550 = dma.done.wait [#allocation6], 8704  }
  0xaa   :  { %2551 = vsyncadd [#allocation6], 4294958592 }
  0xab   :  { %2552 = dma.done.wait [#allocation9], 6144  }
  0xac   :  { %2553 = vsyncadd [#allocation9], 4294961152 }
  0xad   :  { %2554 = dma.done.wait [#allocation12], 2048  }
  0xae   :  { %2555 = vsyncadd [#allocation12], 4294965248 }
  0xaf   :  { %2556 = dma.done.wait [#allocation15], 2048  }
  0xb0   :  { %2557 = vsyncadd [#allocation15], 4294965248  ;;  %v2575_v0 = vmov 0   ;;  %v2130_v1 = vld [vmem:[#allocation5 + $0x4] ss:$16 sps:$4 sm:$0xff]   ;;  %v179_v3 = vld [vmem:[#allocation2] sm:$0xff]  ;;  %v308_v60 = vlaneseq }
  0xb1   :  { %242 = vmatprep.mubr.bf16.mxu1 %v2575_v0  ;;  %v2132_v2 = vld [vmem:[#allocation5] ss:$16 sps:$4 sm:$0xff]   ;;  %210 = vmatprep.subr.bf16.mxu1 %v2130_v1  ;;  %v185_v4 = vpack.c.bf16 %v179_v3, %v179_v3  ;;  %v2133_v5 = vld [vmem:[#allocation5 + $0x8] ss:$16 sps:$4 sm:$0xff]   ;;  %v2135_v6 = vld [vmem:[#allocation5 + $0xc] ss:$16 sps:$4 sm:$0xff]  }
  0xb2   :  { %211 = vmatpush1.bf16.msra.mxu1 %v2132_v2  ;;  %vm206_vm0 = vcmask 130048   ;;  %v2136_v7 = vld [vmem:[#allocation7 + $0x4] ss:$8 sps:$4 sm:$0xff]   ;;  %v2138_v8 = vld [vmem:[#allocation7] ss:$8 sps:$4 sm:$0xff]   ;;  %v309_v1 = vshrl.u32 %v308_v60, 7 }
  0xb3   :  { %251 = vmatprep.subr.bf16.mxu1 %v2135_v6  ;;  %746 = vmatprep.subr.bf16.mxu0 %v2136_v7  ;;  %v2139_v9 = vld [vmem:[#allocation7 + $0x14] ss:$8 sps:$4 sm:$0xff]   ;;  %v2141_v10 = vld [vmem:[#allocation7 + $0x10] ss:$8 sps:$4 sm:$0xff]   ;;  %v2142_v11 = vld [vmem:[#allocation7 + $0x24] ss:$8 sps:$4 sm:$0xff]  }
  0xb4   :  { %747 = vmatpush1.bf16.msra.mxu0 %v2138_v8  ;;  %v2144_v12 = vld [vmem:[#allocation7 + $0x20] ss:$8 sps:$4 sm:$0xff]   ;;  %v2145_v13 = vld [vmem:[#allocation7 + $0x34] ss:$8 sps:$4 sm:$0xff]   ;;  %v2147_v14 = vld [vmem:[#allocation7 + $0x30] ss:$8 sps:$4 sm:$0xff]  }
  0xb5   :  { %1819 = vmatmul.mubr.msk.bf16.vlgmr.msra.gmra.mrb[0].mxu1 %vm206_vm0, %v185_v4  ;;  %748 = vmatprep.subr.bf16.mxu0 %v2139_v9  ;;  %v2148_v15 = vld [vmem:[#allocation7 + $0x44] ss:$8 sps:$4 sm:$0xff]   ;;  %v2150_v16 = vld [vmem:[#allocation7 + $0x40] ss:$8 sps:$4 sm:$0xff]   ;;  %v2151_v17 = vld [vmem:[#allocation7 + $0x54] ss:$8 sps:$4 sm:$0xff]  }
  0xb6   :  { %252 = vmatpush1.bf16.msra.mxu1 %v2133_v5  ;;  %283 = vmatprep.mubr.bf16.mxu1 %v2575_v0  ;;  %v2153_v18 = vld [vmem:[#allocation7 + $0x50] ss:$8 sps:$4 sm:$0xff]   ;;  %v2154_v19 = vld [vmem:[#allocation7 + $0x64] ss:$8 sps:$4 sm:$0xff]   ;;  %v2156_v20 = vld [vmem:[#allocation7 + $0x60] ss:$8 sps:$4 sm:$0xff]  }
  0xb7   :  { %v2157_v21 = vld [vmem:[#allocation7 + $0x74] ss:$8 sps:$4 sm:$0xff]   ;;  %v2159_v22 = vld [vmem:[#allocation7 + $0x70] ss:$8 sps:$4 sm:$0xff]   ;;  %v2160_v23 = vld [vmem:[#allocation7 + $0x84] ss:$8 sps:$4 sm:$0xff]  }
  0xb8   :  { %749 = vmatpush1.bf16.msra.mxu0 %v2141_v10  ;;  %v2162_v24 = vld [vmem:[#allocation7 + $0x80] ss:$8 sps:$4 sm:$0xff]   ;;  %v2163_v25 = vld [vmem:[#allocation7 + $0x94] ss:$8 sps:$4 sm:$0xff]   ;;  %v2165_v26 = vld [vmem:[#allocation7 + $0x90] ss:$8 sps:$4 sm:$0xff]  }
  0xb9   :  { %750 = vmatprep.subr.bf16.mxu0 %v2142_v11  ;;  %v2166_v27 = vld [vmem:[#allocation7 + $0xa4] ss:$8 sps:$4 sm:$0xff]   ;;  %v2168_v28 = vld [vmem:[#allocation7 + $0xa0] ss:$8 sps:$4 sm:$0xff]   ;;  %v2169_v29 = vld [vmem:[#allocation7 + $0xb4] ss:$8 sps:$4 sm:$0xff]  }
  0xba   :  { %v2171_v30 = vld [vmem:[#allocation7 + $0xb0] ss:$8 sps:$4 sm:$0xff]   ;;  %v2172_v31 = vld [vmem:[#allocation7 + $0xc4] ss:$8 sps:$4 sm:$0xff]   ;;  %v2174_v32 = vld [vmem:[#allocation7 + $0xc0] ss:$8 sps:$4 sm:$0xff]  }
  0xbb   :  { %v2175_v33 = vld [vmem:[#allocation7 + $0xd4] ss:$8 sps:$4 sm:$0xff]   ;;  %v2177_v34 = vld [vmem:[#allocation7 + $0xd0] ss:$8 sps:$4 sm:$0xff]   ;;  %v2178_v35 = vld [vmem:[#allocation7 + $0xe4] ss:$8 sps:$4 sm:$0xff]  }
  0xbc   :  { %751 = vmatpush1.bf16.msra.mxu0 %v2144_v12  ;;  %v2180_v36 = vld [vmem:[#allocation7 + $0xe0] ss:$8 sps:$4 sm:$0xff]   ;;  %v2181_v37 = vld [vmem:[#allocation7 + $0xf4] ss:$8 sps:$4 sm:$0xff]   ;;  %v2183_v38 = vld [vmem:[#allocation7 + $0xf0] ss:$8 sps:$4 sm:$0xff]  }
  0xbd   :  { %1820 = vmatmul.mubr.msk.bf16.vlgmr.msra.gmra.mrb[4].mxu1 %vm206_vm0, %v185_v4  ;;  %752 = vmatprep.subr.bf16.mxu0 %v2145_v13  ;;  %v2186_v39 = vld [vmem:[#allocation7 + $0x104] ss:$8 sps:$4 sm:$0xff]   ;;  %v2232_v40 = vld [vmem:[#allocation8] ss:$8 sps:$4 sm:$0xff]   ;;  %v2237_v42 = vld [vmem:[#allocation8 + $0x14] ss:$8 sps:$4 sm:$0xff]  }
  0xbe   :  { %v2234_v41 = vld [vmem:[#allocation8 + $0x4] ss:$8 sps:$4 sm:$0xff]   ;;  %v2235_v43 = vld [vmem:[#allocation8 + $0x10] ss:$8 sps:$4 sm:$0xff]   ;;  %v2238_v45 = vld [vmem:[#allocation8 + $0x20] ss:$8 sps:$4 sm:$0xff]  }
  0xbf   :  { %1066 = vmatprep.subr.bf16.mxu1 %v2234_v41  ;;  %v2240_v44 = vld [vmem:[#allocation8 + $0x24] ss:$8 sps:$4 sm:$0xff]   ;;  %v2243_v46 = vld [vmem:[#allocation8 + $0x34] ss:$8 sps:$4 sm:$0xff]   ;;  %v2241_v47 = vld [vmem:[#allocation8 + $0x30] ss:$8 sps:$4 sm:$0xff]  }
  0xc0   :  { %753 = vmatpush1.bf16.msra.mxu0 %v2147_v14  ;;  %1067 = vmatpush1.bf16.msra.mxu1 %v2232_v40  ;;  %v2246_v48 = vld [vmem:[#allocation8 + $0x44] ss:$8 sps:$4 sm:$0xff]   ;;  %v2244_v49 = vld [vmem:[#allocation8 + $0x40] ss:$8 sps:$4 sm:$0xff]   ;;  %v2249_v50 = vld [vmem:[#allocation8 + $0x54] ss:$8 sps:$4 sm:$0xff]  }
  0xc1   :  { %754 = vmatprep.subr.bf16.mxu0 %v2148_v15  ;;  %1068 = vmatprep.subr.bf16.mxu1 %v2237_v42  ;;  %v2247_v51 = vld [vmem:[#allocation8 + $0x50] ss:$8 sps:$4 sm:$0xff]   ;;  %v2252_v52 = vld [vmem:[#allocation8 + $0x64] ss:$8 sps:$4 sm:$0xff]   ;;  %v2250_v53 = vld [vmem:[#allocation8 + $0x60] ss:$8 sps:$4 sm:$0xff]  }
  0xc2   :  { %v2255_v54 = vld [vmem:[#allocation8 + $0x74] ss:$8 sps:$4 sm:$0xff]   ;;  %v2253_v55 = vld [vmem:[#allocation8 + $0x70] ss:$8 sps:$4 sm:$0xff]   ;;  %v2258_v56 = vld [vmem:[#allocation8 + $0x84] ss:$8 sps:$4 sm:$0xff]  }
  0xc3   :  { %v2256_v57 = vld [vmem:[#allocation8 + $0x80] ss:$8 sps:$4 sm:$0xff]   ;;  %v2576_v58 = vmov 1966171168   ;;  %v2261_v61 = vld [vmem:[#allocation8 + $0x94] ss:$8 sps:$4 sm:$0xff]  }
  0xc4   :  { %755 = vmatpush1.bf16.msra.mxu0 %v2150_v16  ;;  %1069 = vmatpush1.bf16.msra.mxu1 %v2235_v43  ;;  %v306_v59 = vunpack.c.l.s4 %v2576_v58  ;;  %v2259_v62 = vld [vmem:[#allocation8 + $0x90] ss:$8 sps:$4 sm:$0xff]   ;;  %v2264_v2 = vld [vmem:[#allocation8 + $0xa4] ss:$8 sps:$4 sm:$0xff]   ;;  %v2262_v4 = vld [vmem:[#allocation8 + $0xa0] ss:$8 sps:$4 sm:$0xff]  }
  0xc5   :  { %756 = vmatprep.subr.bf16.mxu0 %v2151_v17  ;;  %1070 = vmatprep.subr.bf16.mxu1 %v2240_v44  ;;  %v1821_v3 = vld.sshfl [vmem:[%s2936_s2] sm:$0x33 pattern:$0x75316420]  ;;  %v2267_v6 = vld [vmem:[#allocation8 + $0xb4] ss:$8 sps:$4 sm:$0xff]  }
  0xc6   :  { %v307_v63 = vunpack.c.0.s8 %v306_v59  ;;  %v304_v7 = vcombine.high %v1821_v3, %v1821_v3  ;;  %v2265_v8 = vld [vmem:[#allocation8 + $0xb0] ss:$8 sps:$4 sm:$0xff]   ;;  %v2270_v10 = vld [vmem:[#allocation8 + $0xc4] ss:$8 sps:$4 sm:$0xff]   ;;  %v2268_v12 = vld [vmem:[#allocation8 + $0xc0] ss:$8 sps:$4 sm:$0xff]  }
  0xc7   :  { %v2835_v14 = vsub.s32 0, %v309_v1  ;;  %v2273_v15 = vld [vmem:[#allocation8 + $0xd4] ss:$8 sps:$4 sm:$0xff]   ;;  %v2271_v17 = vld [vmem:[#allocation8 + $0xd0] ss:$8 sps:$4 sm:$0xff]   ;;  %vm2578_vm1 = vmmov 0  }
  0xc8   :  { %757 = vmatpush1.bf16.msra.mxu0 %v2153_v18  ;;  %1071 = vmatpush1.bf16.msra.mxu1 %v2238_v45  ;;  %v2827_v5 = vsub.s32 %v307_v63, %v309_v1  ;;  %v2187_v42 = vld [vmem:[#allocation7 + $0x110] ss:$8 sps:$4 sm:$0xff]   ;;  %v2192_v44 = vld [vmem:[#allocation7 + $0x124] ss:$8 sps:$4 sm:$0xff]   ;;  %v2208_v59 = vld [vmem:[#allocation7 + $0x180] ss:$8 sps:$4 sm:$0xff]  }
  0xc9   :  { %758 = vmatprep.subr.bf16.mxu0 %v2154_v19  ;;  %1072 = vmatprep.subr.bf16.mxu1 %v2243_v46  ;;  %v2190_v46 = vld [vmem:[#allocation7 + $0x120] ss:$8 sps:$4 sm:$0xff]   ;;  %v2210_v58 = vld [vmem:[#allocation7 + $0x184] ss:$8 sps:$4 sm:$0xff]   ;;  %v2213_v60 = vld [vmem:[#allocation7 + $0x194] ss:$8 sps:$4 sm:$0xff]  }
  0xca   :  { %v2830_v9 = vrot.slane %v1821_v3, %v2827_v5  ;;  %v318_v11 = vrot.slane %v304_v7, %v2827_v5  ;;  %v2214_v63 = vld [vmem:[#allocation7 + $0x1a0] ss:$8 sps:$4 sm:$0xff]   ;;  %v2219_v1 = vld [vmem:[#allocation7 + $0x1b4] ss:$8 sps:$4 sm:$0xff]   ;;  %v2222_v3 = vld [vmem:[#allocation7 + $0x1c4] ss:$8 sps:$4 sm:$0xff]  }
  0xcc   :  { %759 = vmatpush1.bf16.msra.mxu0 %v2156_v20  ;;  %1073 = vmatpush1.bf16.msra.mxu1 %v2241_v47  ;;  %v322_v13 = vpack.i.b16 %v2830_v9, %v2830_v9  ;;  %v329_v16 = vpack.i.b16 %v318_v11, %v318_v11 }
  0xcd   :  { %760 = vmatprep.subr.bf16.mxu0 %v2157_v21  ;;  %1074 = vmatprep.subr.bf16.mxu1 %v2246_v48  ;;  %v320_v21 = vcombine.high %v318_v11, %v318_v11  ;;  %v2195_v48 = vld [vmem:[#allocation7 + $0x134] ss:$8 sps:$4 sm:$0xff]  }
  0xce   :  { %v327_v18 = vrot.slane %v322_v13, %v2835_v14  ;;  %v334_v20 = vrot.slane %v329_v16, %v2835_v14  ;;  %v2228_v13 = vld [vmem:[#allocation7 + $0x1e4] ss:$8 sps:$4 sm:$0xff]  }
  0xd0   :  { %761 = vmatpush1.bf16.msra.mxu0 %v2159_v22  ;;  %1075 = vmatpush1.bf16.msra.mxu1 %v2244_v49  ;;  %v2193_v49 = vld [vmem:[#allocation7 + $0x130] ss:$8 sps:$4 sm:$0xff]  }
  0xd1   :  { %762 = vmatprep.subr.bf16.mxu0 %v2160_v23  ;;  %1076 = vmatprep.subr.bf16.mxu1 %v2249_v50  ;;  %v2198_v50 = vld [vmem:[#allocation7 + $0x144] ss:$8 sps:$4 sm:$0xff]  }
  0xd4   :  { %763 = vmatpush1.bf16.msra.mxu0 %v2162_v24  ;;  %1077 = vmatpush1.bf16.msra.mxu1 %v2247_v51  ;;  %v2196_v51 = vld [vmem:[#allocation7 + $0x140] ss:$8 sps:$4 sm:$0xff]  }
  0xd5   :  { %764 = vmatprep.subr.bf16.mxu0 %v2163_v25  ;;  %1078 = vmatprep.subr.bf16.mxu1 %v2252_v52  ;;  %v2201_v52 = vld [vmem:[#allocation7 + $0x154] ss:$8 sps:$4 sm:$0xff]  }
  0xd8   :  { %765 = vmatpush1.bf16.msra.mxu0 %v2165_v26  ;;  %1079 = vmatpush1.bf16.msra.mxu1 %v2250_v53  ;;  %v2199_v53 = vld [vmem:[#allocation7 + $0x150] ss:$8 sps:$4 sm:$0xff]  }
  0xd9   :  { %766 = vmatprep.subr.bf16.mxu0 %v2166_v27  ;;  %1080 = vmatprep.subr.bf16.mxu1 %v2255_v54  ;;  %v2204_v54 = vld [vmem:[#allocation7 + $0x164] ss:$8 sps:$4 sm:$0xff]  }
  0xdc   :  { %767 = vmatpush1.bf16.msra.mxu0 %v2168_v28  ;;  %1081 = vmatpush1.bf16.msra.mxu1 %v2253_v55  ;;  %v2202_v55 = vld [vmem:[#allocation7 + $0x160] ss:$8 sps:$4 sm:$0xff]  }
  0xdd   :  { %768 = vmatprep.subr.bf16.mxu0 %v2169_v29  ;;  %1082 = vmatprep.subr.bf16.mxu1 %v2258_v56  ;;  %v343_v29 = vpack.i.b16 %v320_v21, %v320_v21  ;;  %v2207_v56 = vld [vmem:[#allocation7 + $0x174] ss:$8 sps:$4 sm:$0xff]   ;;  %v2274_v21 = vld [vmem:[#allocation8 + $0xe0] ss:$8 sps:$4 sm:$0xff]  }
  0xe0   :  { %769 = vmatpush1.bf16.msra.mxu0 %v2171_v30  ;;  %1083 = vmatpush1.bf16.msra.mxu1 %v2256_v57  ;;  %v2205_v57 = vld [vmem:[#allocation7 + $0x170] ss:$8 sps:$4 sm:$0xff]  }
  0xe1   :  { %770 = vmatprep.subr.bf16.mxu0 %v2172_v31  ;;  %1084 = vmatprep.subr.bf16.mxu1 %v2261_v61  ;;  %v2211_v61 = vld [vmem:[#allocation7 + $0x190] ss:$8 sps:$4 sm:$0xff]  }
  0xe4   :  { %771 = vmatpush1.bf16.msra.mxu0 %v2174_v32  ;;  %1085 = vmatpush1.bf16.msra.mxu1 %v2259_v62  ;;  %v2216_v62 = vld [vmem:[#allocation7 + $0x1a4] ss:$8 sps:$4 sm:$0xff]  }
  0xe5   :  { %772 = vmatprep.subr.bf16.mxu0 %v2175_v33  ;;  %1086 = vmatprep.subr.bf16.mxu1 %v2264_v2  ;;  %v2184_v33 = vld [vmem:[#allocation7 + $0x100] ss:$8 sps:$4 sm:$0xff]   ;;  %v2217_v2 = vld [vmem:[#allocation7 + $0x1b0] ss:$8 sps:$4 sm:$0xff]  }
  0xe8   :  { %773 = vmatpush1.bf16.msra.mxu0 %v2177_v34  ;;  %1087 = vmatpush1.bf16.msra.mxu1 %v2262_v4  ;;  %v319_v4 = vcombine.high %v2830_v9, %v2830_v9  ;;  %v2229_v9 = vld [vmem:[#allocation7 + $0x1f0] ss:$8 sps:$4 sm:$0xff]  }
  0xe9   :  { %774 = vmatprep.subr.bf16.mxu0 %v2178_v35  ;;  %1088 = vmatprep.subr.bf16.mxu1 %v2267_v6  ;;  %v348_v35 = vrot.slane %v343_v29, %v2835_v14  ;;  %v2220_v6 = vld [vmem:[#allocation7 + $0x1c0] ss:$8 sps:$4 sm:$0xff]  }
  0xea   :  { %v336_v7 = vpack.i.b16 %v319_v4, %v319_v4 }
  0xec   :  { %775 = vmatpush1.bf16.msra.mxu0 %v2180_v36  ;;  %1089 = vmatpush1.bf16.msra.mxu1 %v2265_v8  ;;  %v2225_v8 = vld [vmem:[#allocation7 + $0x1d4] ss:$8 sps:$4 sm:$0xff]  }
  0xed   :  { %776 = vmatprep.subr.bf16.mxu0 %v2181_v37  ;;  %1090 = vmatprep.subr.bf16.mxu1 %v2270_v10  ;;  %v2189_v37 = vld [vmem:[#allocation7 + $0x114] ss:$8 sps:$4 sm:$0xff]   ;;  %v2223_v10 = vld [vmem:[#allocation7 + $0x1d0] ss:$8 sps:$4 sm:$0xff]  }
  0xf0   :  { %777 = vmatpush1.bf16.msra.mxu0 %v2183_v38  ;;  %1091 = vmatpush1.bf16.msra.mxu1 %v2268_v12  ;;  %v341_v12 = vrot.slane %v336_v7, %v2835_v14 }
  0xf1   :  { %787 = vmatprep.subr.bf16.mxu0 %v2186_v39  ;;  %1092 = vmatprep.subr.bf16.mxu1 %v2273_v15  ;;  %v2226_v15 = vld [vmem:[#allocation7 + $0x1e0] ss:$8 sps:$4 sm:$0xff]  }
  0xf4   :  { %1093 = vmatpush1.bf16.msra.mxu1 %v2271_v17  ;;  %v2231_v17 = vld [vmem:[#allocation7 + $0x1f4] ss:$8 sps:$4 sm:$0xff]  }
 0x188   :  { %v244_v19 = vpop.f32.mrb[0].mxu1 }
 0x189   :  { %v292_v22 = vpack.c.bf16 %v244_v19, %v244_v19  ;;  %v246_v23 = vpop.f32.mrb[1].mxu1 }
 0x18a   :  { %v293_v24 = vpack.c.bf16 %v246_v23, %v246_v23  ;;  %v248_v25 = vpop.f32.mrb[2].mxu1  ;;  %v2277_v23 = vld [vmem:[#allocation8 + $0xf0] ss:$8 sps:$4 sm:$0xff]  }
 0x18b   :  { %v349_v26 = vadd.bf16 %v327_v18, %v292_v22  ;;  %v249_v27 = vpop.f32.mrb[3].mxu1  ;;  %v2279_v22 = vld [vmem:[#allocation8 + $0xf4] ss:$8 sps:$4 sm:$0xff]  }
 0x18c   :  { %v350_v28 = vadd.bf16 %v334_v20, %v293_v24  ;;  %v2276_v20 = vld [vmem:[#allocation8 + $0xe4] ss:$8 sps:$4 sm:$0xff]   ;;  %v1886_v25 = vld.sshfl [vmem:[%s2938_s4] sm:$0x11 pattern:$0x75316420] }
 0x18d   :  { %v353_v30 = vmul.bf16 1009007652, %v349_v26  ;;  %1094 = vmatprep.subr.bf16.mxu1 %v2276_v20  ;;  %v2280_v24 = vld [vmem:[#allocation10 + $0x40] sm:$0xff]   ;;  %v845_v27 = vrot.slane %v1886_v25, %v2827_v5 }
 0x18e   :  { %v354_v31 = vmul.bf16 1009007652, %v350_v28  ;;  %1095 = vmatpush1.bf16.msra.mxu1 %v2274_v21  ;;  %v2298_v21 = vld [vmem:[#allocation11 + $0x10] sm:$0xff]  }
 0x18f   :  { %v357_v36 = vmax.bf16 %v353_v30, %v349_v26  ;;  %1096 = vmatprep.subr.bf16.mxu1 %v2279_v22  ;;  %v838_v26 = vcombine.high %v1886_v25, %v1886_v25  ;;  %v854_v29 = vpack.i.b16 %v845_v27, %v845_v27  ;;  %v2299_v22 = vld [vmem:[#allocation11 + $0x18] sm:$0xff]   ;;  %v2302_v25 = vld [vmem:[#allocation11 + $0x30] sm:$0xff]   ;;  %v2304_v27 = vld [vmem:[#allocation13] sm:$0xff]  }
 0x190   :  { %v358_v32 = vmax.bf16 %v354_v31, %v350_v28  ;;  %v2839_v34 = vpop.f32.mrb[4].mxu1 }
 0x191   :  { %v287_v38 = vpop.f32.mrb[5].mxu1  ;;  %v294_v11 = vpack.c.bf16 %v2839_v34, %v2839_v34  ;;  %v852_v28 = vrot.slane %v838_v26, %v2827_v5  ;;  %v859_v31 = vrot.slane %v854_v29, %v2835_v14  ;;  %v2303_v26 = vld [vmem:[#allocation11 + $0x38] sm:$0xff]   ;;  %v2306_v29 = vld [vmem:[#allocation13 + $0x10] sm:$0xff]  }
 0x192   :  { %778 = vmatprep.mubr.bf16.mxu0 %v358_v32  ;;  %v295_v39 = vpack.c.bf16 %v287_v38, %v287_v38  ;;  %v289_v40 = vpop.f32.mrb[6].mxu1  ;;  %1097 = vmatpush1.bf16.msra.mxu1 %v2277_v23  ;;  %v2300_v23 = vld [vmem:[#allocation11 + $0x20] sm:$0xff]  }
 0x193   :  { %779 = vmatmul.mubr.bf16.vlgmr.msra.gmra.mrb[0].mxu0 %v357_v36  ;;  %v290_v41 = vpop.f32.mrb[7].mxu1  ;;  %v351_v16 = vadd.bf16 %v341_v12, %v294_v11  ;;  %1968 = vmatprep.subr.bf16.mxu1 %v2280_v24  ;;  %v861_v30 = vpack.i.b16 %v852_v28, %v852_v28  ;;  %v2301_v24 = vld [vmem:[#allocation11 + $0x28] sm:$0xff]  }
 0x194   :  { %788 = vmatpush1.bf16.msra.mxu0 %v2184_v33  ;;  %v352_v43 = vadd.bf16 %v348_v35, %v295_v39  ;;  %v2305_v28 = vld [vmem:[#allocation13 + $0x8] sm:$0xff]  }
 0x195   :  { %789 = vmatprep.subr.bf16.mxu0 %v2189_v37  ;;  %v355_v18 = vmul.bf16 1009007652, %v351_v16  ;;  %v866_v33 = vrot.slane %v861_v30, %v2835_v14  ;;  %v2307_v30 = vld [vmem:[#allocation13 + $0x18] sm:$0xff]  }
 0x196   :  { %v356_v45 = vmul.bf16 1009007652, %v352_v43 }
 0x197   :  { %v359_v19 = vmax.bf16 %v355_v18, %v351_v16 }
 0x198   :  { %790 = vmatpush1.bf16.msra.mxu0 %v2187_v42  ;;  %v360_v47 = vmax.bf16 %v356_v45, %v352_v43 }
 0x199   :  { %791 = vmatprep.subr.bf16.mxu0 %v2192_v44  ;;  %v2281_v44 = vld [vmem:[#allocation10] sm:$0xff]  }
 0x19a   :  { %819 = vmatprep.mubr.bf16.mxu0 %v360_v47  ;;  %v2283_v47 = vld [vmem:[#allocation10 + $0x8] sm:$0xff]  }
 0x19c   :  { %792 = vmatpush1.bf16.msra.mxu0 %v2190_v46  ;;  %v2282_v46 = vld [vmem:[#allocation10 + $0x48] sm:$0xff]  }
 0x19d   :  { %793 = vmatprep.subr.bf16.mxu0 %v2195_v48  ;;  %v2284_v48 = vld [vmem:[#allocation10 + $0x50] sm:$0xff]  }
 0x1a0   :  { %794 = vmatpush1.bf16.msra.mxu0 %v2193_v49  ;;  %v2285_v49 = vld [vmem:[#allocation10 + $0x10] sm:$0xff]  }
 0x1a1   :  { %795 = vmatprep.subr.bf16.mxu0 %v2198_v50  ;;  %v2286_v50 = vld [vmem:[#allocation10 + $0x58] sm:$0xff]  }
 0x1a4   :  { %796 = vmatpush1.bf16.msra.mxu0 %v2196_v51  ;;  %v2287_v51 = vld [vmem:[#allocation10 + $0x18] sm:$0xff]  }
 0x1a5   :  { %797 = vmatprep.subr.bf16.mxu0 %v2201_v52  ;;  %v2288_v52 = vld [vmem:[#allocation10 + $0x60] sm:$0xff]  }
 0x1a8   :  { %798 = vmatpush1.bf16.msra.mxu0 %v2199_v53  ;;  %v2289_v53 = vld [vmem:[#allocation10 + $0x20] sm:$0xff]  }
 0x1a9   :  { %799 = vmatprep.subr.bf16.mxu0 %v2204_v54  ;;  %v2290_v54 = vld [vmem:[#allocation10 + $0x68] sm:$0xff]  }
 0x1ac   :  { %800 = vmatpush1.bf16.msra.mxu0 %v2202_v55  ;;  %v2291_v55 = vld [vmem:[#allocation10 + $0x28] sm:$0xff]  }
 0x1ad   :  { %801 = vmatprep.subr.bf16.mxu0 %v2207_v56  ;;  %v2292_v56 = vld [vmem:[#allocation10 + $0x70] sm:$0xff]  }
 0x1b0   :  { %802 = vmatpush1.bf16.msra.mxu0 %v2205_v57  ;;  %v2293_v57 = vld [vmem:[#allocation10 + $0x30] sm:$0xff]  }
 0x1b1   :  { %803 = vmatprep.subr.bf16.mxu0 %v2210_v58  ;;  %v2294_v58 = vld [vmem:[#allocation10 + $0x78] sm:$0xff]  }
 0x1b4   :  { %804 = vmatpush1.bf16.msra.mxu0 %v2208_v59  ;;  %v2295_v59 = vld [vmem:[#allocation10 + $0x38] sm:$0xff]  }
 0x1b5   :  { %805 = vmatprep.subr.bf16.mxu0 %v2213_v60  ;;  %v2577_v60 = vmov 0.0  }
 0x1b8   :  { %806 = vmatpush1.bf16.msra.mxu0 %v2211_v61  ;;  %v1919_v61 = vld.sshfl [vmem:[%s2940_s6] sm:$0x11 pattern:$0x75316420] }
 0x1b9   :  { %807 = vmatprep.subr.bf16.mxu0 %v2216_v62  ;;  %v1117_v62 = vcombine.high %v1919_v61, %v1919_v61 }
 0x1bc   :  { %808 = vmatpush1.bf16.msra.mxu0 %v2214_v63  ;;  %v1124_v63 = vrot.slane %v1919_v61, %v2827_v5 }
 0x1bd   :  { %809 = vmatprep.subr.bf16.mxu0 %v2219_v1  ;;  %v1131_v1 = vrot.slane %v1117_v62, %v2827_v5  ;;  %v2297_v5 = vld [vmem:[#allocation11 + $0x8] sm:$0xff]  }
 0x1c0   :  { %810 = vmatpush1.bf16.msra.mxu0 %v2217_v2  ;;  %v1133_v2 = vpack.i.b16 %v1124_v63, %v1124_v63 }
 0x1c1   :  { %811 = vmatprep.subr.bf16.mxu0 %v2222_v3  ;;  %v1140_v3 = vpack.i.b16 %v1131_v1, %v1131_v1 }
 0x1c2   :  { %v1138_v4 = vrot.slane %v1133_v2, %v2835_v14  ;;  %v2318_v2 = vld [vmem:[#allocation14 + $0x30] sm:$0xff]  }
 0x1c3   :  { %v1145_v7 = vrot.slane %v1140_v3, %v2835_v14  ;;  %v2319_v3 = vld [vmem:[#allocation14 + $0x38] sm:$0xff]  }
 0x1c4   :  { %812 = vmatpush1.bf16.msra.mxu0 %v2220_v6 }
 0x1c5   :  { %813 = vmatprep.subr.bf16.mxu0 %v2225_v8 }
 0x1c8   :  { %814 = vmatpush1.bf16.msra.mxu0 %v2223_v10 }
 0x1c9   :  { %815 = vmatprep.subr.bf16.mxu0 %v2228_v13 }
 0x1cc   :  { %816 = vmatpush1.bf16.msra.mxu0 %v2226_v15 }
 0x1cd   :  { %817 = vmatprep.subr.bf16.mxu0 %v2231_v17 }
 0x1d0   :  { %818 = vmatpush1.bf16.msra.mxu0 %v2229_v9 }
 0x1d1   :  { %2046 = vmatprep.subr.bf16.mxu0 %v2577_v60 }
 0x1d3   :  { %820 = vmatmul.mubr.bf16.vlgmr.msra.gmra.mrb[0].mxu0 %v359_v19  ;;  %v2296_v19 = vld [vmem:[#allocation11] sm:$0xff]  }
 0x1d4   :  { %2062 = vmatprep.mubr.msk.bf16.mxu0 %vm2578_vm1, %v2577_v60  ;;  %2047 = vmatpush3.bf16.msra.mxu0 %v2304_v27 }
 0x1d5   :  { %2048 = vmatprep.subr.bf16.mxu0 %v2577_v60 }
 0x1d8   :  { %2049 = vmatpush3.bf16.msra.mxu0 %v2305_v28 }
 0x1d9   :  { %2050 = vmatprep.subr.bf16.mxu0 %v2577_v60 }
 0x1dc   :  { %2051 = vmatpush3.bf16.msra.mxu0 %v2306_v29 }
 0x1dd   :  { %2052 = vmatprep.subr.bf16.mxu0 %v2577_v60 }
 0x1e0   :  { %2053 = vmatpush3.bf16.msra.mxu0 %v2307_v30 }
 0x1e1   :  { %2054 = vmatprep.subr.bf16.mxu0 %v2577_v60 }
 0x2a6   :  { %v821_v32 = vpop.f32.mrb[0].mxu0 }
 0x2a7   :  { %v828_v34 = vpack.c.bf16 %v821_v32, %v821_v32  ;;  %v823_v35 = vpop.f32.mrb[1].mxu0  ;;  %v2309_v32 = vld [vmem:[#allocation13 + $0x28] sm:$0xff]  }
 0x2a8   :  { %v829_v36 = vpack.c.bf16 %v823_v35, %v823_v35  ;;  %v825_v37 = vpop.f32.mrb[2].mxu0 }
 0x2a9   :  { %v867_v38 = vadd.bf16 %v859_v31, %v828_v34  ;;  %v826_v39 = vpop.f32.mrb[3].mxu0  ;;  %v2308_v31 = vld [vmem:[#allocation13 + $0x20] sm:$0xff]  }
 0x2aa   :  { %v868_v40 = vadd.bf16 %v866_v33, %v829_v36  ;;  %2055 = vmatpush3.bf16.msra.mxu0 %v2308_v31  ;;  %v1184_v33 = vld [vmem:[%s2942_s8] sm:$0x1] }
 0x2ab   :  { %v869_v41 = vmul.bf16 1009007652, %v867_v38  ;;  %2056 = vmatprep.subr.bf16.mxu0 %v2577_v60  ;;  %v1323_v34 = vpack.i.b16 %v1184_v33, %v1184_v33 }
 0x2ac   :  { %v870_v42 = vmul.bf16 1009007652, %v868_v40 }
 0x2ad   :  { %v871_v45 = vmax.bf16 %v869_v41, %v867_v38  ;;  %v1328_v38 = vrot.slane %v1323_v34, %v2835_v14 }
 0x2ae   :  { %v872_v43 = vmax.bf16 %v870_v42, %v868_v40  ;;  %2057 = vmatpush3.bf16.msra.mxu0 %v2309_v32 }
 0x2af   :  { %2058 = vmatprep.subr.bf16.mxu0 %v2577_v60 }
 0x2b0   :  { %1098 = vmatprep.mubr.bf16.mxu1 %v872_v43 }
 0x2b1   :  { %1099 = vmatmul.mubr.bf16.vlgmr.msra.gmra.mrb[8].mxu1 %v871_v45  ;;  %v2310_v45 = vld [vmem:[#allocation13 + $0x30] sm:$0xff]  }
 0x2b2   :  { %1969 = vmatpush3.bf16.msra.mxu1 %v2281_v44  ;;  %2059 = vmatpush3.bf16.msra.mxu0 %v2310_v45 }
 0x2b3   :  { %1970 = vmatprep.subr.bf16.mxu1 %v2282_v46  ;;  %2060 = vmatprep.subr.bf16.mxu0 %v2577_v60  ;;  %v2311_v46 = vld [vmem:[#allocation13 + $0x38] sm:$0xff]  }
 0x2b6   :  { %1971 = vmatpush3.bf16.msra.mxu1 %v2283_v47  ;;  %2061 = vmatpush3.bf16.msra.mxu0 %v2311_v46  ;;  %v2312_v47 = vld [vmem:[#allocation14] sm:$0xff]  }
 0x2b7   :  { %1972 = vmatprep.subr.bf16.mxu1 %v2284_v48  ;;  %2086 = vmatprep.subr.bf16.mxu0 %v2577_v60  ;;  %v2313_v48 = vld [vmem:[#allocation14 + $0x8] sm:$0xff]  }
 0x2ba   :  { %1973 = vmatpush3.bf16.msra.mxu1 %v2285_v49  ;;  %v2314_v49 = vld [vmem:[#allocation14 + $0x10] sm:$0xff]  }
 0x2bb   :  { %1974 = vmatprep.subr.bf16.mxu1 %v2286_v50  ;;  %v2315_v50 = vld [vmem:[#allocation14 + $0x18] sm:$0xff]  }
 0x2be   :  { %1975 = vmatpush3.bf16.msra.mxu1 %v2287_v51  ;;  %v2316_v51 = vld [vmem:[#allocation14 + $0x20] sm:$0xff]  }
 0x2bf   :  { %1976 = vmatprep.subr.bf16.mxu1 %v2288_v52  ;;  %v2317_v52 = vld [vmem:[#allocation14 + $0x28] sm:$0xff]  }
 0x2c2   :  { %1977 = vmatpush3.bf16.msra.mxu1 %v2289_v53  ;;  %v1348_v53 = vld [vmem:[%s2944_s10] sm:$0x1] }
 0x2c3   :  { %1978 = vmatprep.subr.bf16.mxu1 %v2290_v54  ;;  %v1439_v54 = vpack.i.b16 %v1348_v53, %v1348_v53 }
 0x2c6   :  { %1979 = vmatpush3.bf16.msra.mxu1 %v2291_v55  ;;  %v1444_v55 = vrot.slane %v1439_v54, %v2835_v14 }
 0x2c7   :  { %1980 = vmatprep.subr.bf16.mxu1 %v2292_v56 }
 0x2ca   :  { %1981 = vmatpush3.bf16.msra.mxu1 %v2293_v57 }
 0x2cb   :  { %1982 = vmatprep.subr.bf16.mxu1 %v2294_v58 }
 0x2ce   :  { %1983 = vmatpush3.bf16.msra.mxu1 %v2295_v59 }
 0x2cf   :  { %2026 = vmatprep.subr.bf16.mxu1 %v2577_v60 }
 0x384   :  { %v1100_v6 = vpop.f32.mrb[8].mxu1 }
 0x385   :  { %v1107_v8 = vpack.c.bf16 %v1100_v6, %v1100_v6  ;;  %v1102_v10 = vpop.f32.mrb[9].mxu1  ;;  %v2321_v6 = vld [vmem:[#allocation16 + $0x8] sm:$0xff]  }
 0x386   :  { %v1108_v11 = vpack.c.bf16 %v1102_v10, %v1102_v10  ;;  %v1104_v12 = vpop.f32.mrb[10].mxu1  ;;  %v2324_v10 = vld [vmem:[#allocation16 + $0x20] sm:$0xff]  }
 0x387   :  { %v1146_v13 = vadd.bf16 %v1138_v4, %v1107_v8  ;;  %v1105_v15 = vpop.f32.mrb[11].mxu1  ;;  %v2320_v4 = vld [vmem:[#allocation16] sm:$0xff]   ;;  %v2323_v8 = vld [vmem:[#allocation16 + $0x18] sm:$0xff]  }
 0x388   :  { %v1147_v16 = vadd.bf16 %v1145_v7, %v1108_v11  ;;  %v2322_v7 = vld [vmem:[#allocation16 + $0x10] sm:$0xff]   ;;  %v2325_v11 = vld [vmem:[#allocation16 + $0x28] sm:$0xff]   ;;  %v1464_v12 = vld [vmem:[%s2946_s12] sm:$0x1] }
 0x389   :  { %v1148_v17 = vmul.bf16 1009007652, %v1146_v13 }
 0x38a   :  { %v1149_v9 = vmul.bf16 1009007652, %v1147_v16 }
 0x38b   :  { %v1150_v20 = vmax.bf16 %v1148_v17, %v1146_v13  ;;  %v1555_v13 = vpack.i.b16 %v1464_v12, %v1464_v12 }
 0x38c   :  { %v1151_v18 = vmax.bf16 %v1149_v9, %v1147_v16 }
 0x38d   :  { %v1560_v15 = vrot.slane %v1555_v13, %v2835_v14 }
 0x38e   :  { %1313 = vmatprep.mubr.bf16.mxu1 %v1151_v18 }
 0x38f   :  { %1314 = vmatmul.mubr.bf16.vlgmr.msra.gmra.mrb[12].mxu1 %v1150_v20 }
 0x390   :  { %2027 = vmatpush3.bf16.msra.mxu1 %v2296_v19  ;;  %2042 = vmatprep.mubr.msk.bf16.mxu1 %vm2578_vm1, %v2577_v60 }
 0x391   :  { %2028 = vmatprep.subr.bf16.mxu1 %v2577_v60 }
 0x394   :  { %2029 = vmatpush3.bf16.msra.mxu1 %v2297_v5 }
 0x395   :  { %2030 = vmatprep.subr.bf16.mxu1 %v2577_v60 }
 0x398   :  { %2031 = vmatpush3.bf16.msra.mxu1 %v2298_v21 }
 0x399   :  { %2032 = vmatprep.subr.bf16.mxu1 %v2577_v60 }
 0x39c   :  { %2033 = vmatpush3.bf16.msra.mxu1 %v2299_v22  ;;  %v2326_v22 = vld [vmem:[#allocation16 + $0x30] sm:$0xff]  }
 0x39d   :  { %2034 = vmatprep.subr.bf16.mxu1 %v2577_v60 }
 0x3a0   :  { %2035 = vmatpush3.bf16.msra.mxu1 %v2300_v23  ;;  %v2327_v23 = vld [vmem:[#allocation16 + $0x38] sm:$0xff]  }
 0x3a1   :  { %2036 = vmatprep.subr.bf16.mxu1 %v2577_v60 }
 0x3a4   :  { %2037 = vmatpush3.bf16.msra.mxu1 %v2301_v24  ;;  %v1580_v24 = vld [vmem:[%s2948_s14] sm:$0x1]  ;;  %s2579_s14 = smov [#allocation17]  }
 0x3a5   :  { %2038 = vmatprep.subr.bf16.mxu1 %v2577_v60  ;;  %s1802_s13 = sshll.u32 %s2579_s14, 4  ;;  %s1803_s13 = int_to_ptr.vmem [resolvable:$true] %s1802_s13 }
 0x3a6   :  { %s2526_s22 = scalar_lea.vmem %s1803_s13, 64  ;;  %p2531_p3 = scmp.lt.s32.totalorder %s1803_s13, %s1803_s13 }
 0x3a7   :  { %p2527_p2 = scmp.ne.s32.totalorder %s1803_s13, %s2526_s22  ;;  %p2532_p4 = scmp.lt.s32.totalorder %s2526_s22, %s2526_s22 }
 0x3a8   :  { %2039 = vmatpush3.bf16.msra.mxu1 %v2302_v25  ;;  %v1671_v25 = vpack.i.b16 %v1580_v24, %v1580_v24 }
 0x3a9   :  { %2040 = vmatprep.subr.bf16.mxu1 %v2577_v60  ;;  %p2533_p5 = por %p2532_p4, %p2531_p3 }
 0x3ab   :  { %p2534_p6 = pnand %p2533_p5, %p2527_p2 }
 0x3ac   :  { %2041 = vmatpush3.bf16.msra.mxu1 %v2303_v26  ;;  %v1676_v26 = vrot.slane %v1671_v25, %v2835_v14 }
 0x3ad   :  { %2066 = vmatprep.subr.bf16.mxu1 %v2577_v60 }
 0x462   :  { %v1984_v35 = vpop.f32.mrb[12].mxu1 }
 0x463   :  { %v1985_v36 = vpop.f32.mrb[13].mxu1 }
 0x464   :  { %v1986_v37 = vadd.f32 %v1985_v36, %v1984_v35  ;;  %v1987_v39 = vpop.f32.mrb[14].mxu1 }
 0x465   :  { %v1988_v40 = vpop.f32.mrb[15].mxu1 }
 0x466   :  { %v1321_v41 = vpack.c.bf16 %v1986_v37, %v1986_v37 }
 0x468   :  { %v1329_v42 = vadd.bf16 %v1328_v38, %v1321_v41 }
 0x46a   :  { %v1330_v43 = vmul.bf16 1009007652, %v1329_v42 }
 0x46c   :  { %v1331_v44 = vmax.bf16 %v1330_v43, %v1329_v42 }
 0x46e   :  { %2043 = vmatmul.mubr.bf16.vlgmr.msra.gmra.mrb[16].mxu1 %v1331_v44 }
 0x46f   :  { %2082 = vmatprep.mubr.msk.bf16.mxu1 %vm2578_vm1, %v2577_v60  ;;  %2067 = vmatpush3.bf16.msra.mxu1 %v2312_v47 }
 0x470   :  { %2068 = vmatprep.subr.bf16.mxu1 %v2577_v60 }
 0x473   :  { %2069 = vmatpush3.bf16.msra.mxu1 %v2313_v48 }
 0x474   :  { %2070 = vmatprep.subr.bf16.mxu1 %v2577_v60 }
 0x477   :  { %2071 = vmatpush3.bf16.msra.mxu1 %v2314_v49 }
 0x478   :  { %2072 = vmatprep.subr.bf16.mxu1 %v2577_v60 }
 0x47b   :  { %2073 = vmatpush3.bf16.msra.mxu1 %v2315_v50 }
 0x47c   :  { %2074 = vmatprep.subr.bf16.mxu1 %v2577_v60 }
 0x47f   :  { %2075 = vmatpush3.bf16.msra.mxu1 %v2316_v51 }
 0x480   :  { %2076 = vmatprep.subr.bf16.mxu1 %v2577_v60 }
 0x483   :  { %2077 = vmatpush3.bf16.msra.mxu1 %v2317_v52 }
 0x484   :  { %2078 = vmatprep.subr.bf16.mxu1 %v2577_v60 }
 0x487   :  { %2079 = vmatpush3.bf16.msra.mxu1 %v2318_v2 }
 0x488   :  { %2080 = vmatprep.subr.bf16.mxu1 %v2577_v60 }
 0x48b   :  { %2081 = vmatpush3.bf16.msra.mxu1 %v2319_v3 }
 0x541   :  { %v1431_v56 = vpop.f32.mrb[16].mxu1 }
 0x542   :  { %v1437_v57 = vpack.c.bf16 %v1431_v56, %v1431_v56  ;;  %v2044_v58 = vpop.f32.mrb[17].mxu1 }
 0x543   :  { %v1434_v59 = vpop.f32.mrb[18].mxu1 }
 0x544   :  { %v1445_v61 = vadd.bf16 %v1444_v55, %v1437_v57  ;;  %v2045_v62 = vpop.f32.mrb[19].mxu1 }
 0x546   :  { %v1446_v63 = vmul.bf16 1009007652, %v1445_v61 }
 0x548   :  { %v1447_v1 = vmax.bf16 %v1446_v63, %v1445_v61 }
 0x54a   :  { %2063 = vmatmul.mubr.bf16.vlgmr.msra.gmra.mrb[4].mxu0 %v1447_v1 }
 0x54b   :  { %2102 = vmatprep.mubr.msk.bf16.mxu0 %vm2578_vm1, %v2577_v60  ;;  %2087 = vmatpush3.bf16.msra.mxu0 %v2320_v4 }
 0x54c   :  { %2088 = vmatprep.subr.bf16.mxu0 %v2577_v60 }
 0x54f   :  { %2089 = vmatpush3.bf16.msra.mxu0 %v2321_v6 }
 0x550   :  { %2090 = vmatprep.subr.bf16.mxu0 %v2577_v60 }
 0x553   :  { %2091 = vmatpush3.bf16.msra.mxu0 %v2322_v7 }
 0x554   :  { %2092 = vmatprep.subr.bf16.mxu0 %v2577_v60 }
 0x557   :  { %2093 = vmatpush3.bf16.msra.mxu0 %v2323_v8 }
 0x558   :  { %2094 = vmatprep.subr.bf16.mxu0 %v2577_v60 }
 0x55b   :  { %2095 = vmatpush3.bf16.msra.mxu0 %v2324_v10 }
 0x55c   :  { %2096 = vmatprep.subr.bf16.mxu0 %v2577_v60 }
 0x55f   :  { %2097 = vmatpush3.bf16.msra.mxu0 %v2325_v11 }
 0x560   :  { %2098 = vmatprep.subr.bf16.mxu0 %v2577_v60 }
 0x563   :  { %2099 = vmatpush3.bf16.msra.mxu0 %v2326_v22 }
 0x564   :  { %2100 = vmatprep.subr.bf16.mxu0 %v2577_v60  ;;  %v1696_v60 = vld [vmem:[%s2950_s16] sm:$0x1] }
 0x565   :  { %v1787_v35 = vpack.i.b16 %v1696_v60, %v1696_v60 }
 0x567   :  { %2101 = vmatpush3.bf16.msra.mxu0 %v2327_v23  ;;  %v1792_v36 = vrot.slane %v1787_v35, %v2835_v14 }
 0x61d   :  { %v1547_v16 = vpop.f32.mrb[4].mxu0 }
 0x61e   :  { %v1553_v17 = vpack.c.bf16 %v1547_v16, %v1547_v16  ;;  %v2064_v9 = vpop.f32.mrb[5].mxu0 }
 0x61f   :  { %v1550_v18 = vpop.f32.mrb[6].mxu0 }
 0x620   :  { %v1561_v19 = vadd.bf16 %v1560_v15, %v1553_v17  ;;  %v2065_v20 = vpop.f32.mrb[7].mxu0 }
 0x622   :  { %v1562_v5 = vmul.bf16 1009007652, %v1561_v19 }
 0x624   :  { %v1563_v21 = vmax.bf16 %v1562_v5, %v1561_v19 }
 0x626   :  { %2083 = vmatmul.mubr.bf16.vlgmr.msra.gmra.mrb[20].mxu1 %v1563_v21 }
 0x6f9   :  { %v1663_v27 = vpop.f32.mrb[20].mxu1 }
 0x6fa   :  { %v1669_v28 = vpack.c.bf16 %v1663_v27, %v1663_v27  ;;  %v2084_v29 = vpop.f32.mrb[21].mxu1 }
 0x6fb   :  { %v1666_v30 = vpop.f32.mrb[22].mxu1 }
 0x6fc   :  { %v1677_v31 = vadd.bf16 %v1676_v26, %v1669_v28  ;;  %v2085_v32 = vpop.f32.mrb[23].mxu1 }
 0x6fe   :  { %v1678_v33 = vmul.bf16 1009007652, %v1677_v31 }
 0x700   :  { %v1679_v34 = vmax.bf16 %v1678_v33, %v1677_v31 }
 0x702   :  { %2103 = vmatmul.mubr.bf16.vlgmr.msra.gmra.mrb[8].mxu0 %v1679_v34 }
 0x7d5   :  { %v1779_v37 = vpop.f32.mrb[8].mxu0 }
 0x7d6   :  { %v1785_v38 = vpack.c.bf16 %v1779_v37, %v1779_v37  ;;  %v2104_v39 = vpop.f32.mrb[9].mxu0 }
 0x7d7   :  { %v1782_v40 = vpop.f32.mrb[10].mxu0 }
 0x7d8   :  { %v1793_v41 = vadd.bf16 %v1792_v36, %v1785_v38  ;;  %v2105_v42 = vpop.f32.mrb[11].mxu0 }
 0x7da   :  { %v1794_v43 = vmax.bf16 %v2575_v0, %v1793_v41 }
 0x7dc   :  { %1795 = vst [vmem:[#allocation17] sm:$0xf] %v1794_v43 }
 0x7dd   :  { %2537 = shalt.err (!%p2534_p6)
}
 0x7de   :  { %s2962_s25 = sld [smem:[#allocation26_spill]] }
 0x7e4   :  { %s2538_s29 = scalar_lea.hbm %s2962_s25, 64 }
 0x7e5   :  { %p2539_p7 = scmp.ne.s32.totalorder %s2962_s25, %s2538_s29  ;;  %p2542_p8 = scmp.lt.u32.totalorder %s2538_s29, %s2962_s25 }
 0x7e7   :  { %p2544_p9 = pnand %p2542_p8, %p2539_p7 }
 0x7e9   :  { %2547 = shalt.err (!%p2544_p9)
}
 0x7ea   :  { %1805 = dma.vmem_to_hbm [thread:$0]  %s1803_s13, 64, %s2962_s25, [#allocation4]  }
 0x7eb   :  { %2558 = dma.done.wait [#allocation4], 64  }
 0x7ec   :  { %2559 = vsyncadd [#allocation4], 4294967232 }
 0x7ed   :  { %1809 = vsyncpa [#allocation3], 1 }
 0x7ee   :  { %1810 = vsyncpa [#allocation6], 1 }
 0x7ef   :  { %1811 = vsyncpa [#allocation9], 1 }
 0x7f0   :  { %1812 = vsyncpa [#allocation12], 1 }
 0x7f1   :  { %1813 = vsyncpa [#allocation15], 1 }
 0x7f2   :  { %1814 = vsyncpa [#allocation4], 1 }

</bundles_post_ra>
